<compile_context>
chip_gen: v6e
topology: v6e:2x2x1
jax: 0.10.0
libtpu: 0.0.40
codegen_flags: <defaults>
</compile_context>

<pallas_src>
import functools

import jax
import jax.numpy as jnp
from jax.experimental import pallas as pl
from jax.experimental.pallas import tpu as pltpu


def _round_up(x: int, m: int) -> int:
    return (x + m - 1) // m * m


# ----------------------------------------------------------------------------
# Fused kernel: whole LAE layer chain for one batch tile.
# ----------------------------------------------------------------------------
def _make_lae_kernel(n_layers: int):
    """Builds kernel(x_ref, w_0, b_0, ..., w_{L-1}, b_{L-1}, o_ref)."""

    def kernel(*refs):
        x_ref = refs[0]                         # bf16 [tm, in_pad_0]
        o_ref = refs[1 + 2 * n_layers]          # f32  [tm, out_pad_{L-1}]

        # Activation carried as a value (compiler keeps it in vregs / spills
        # only if it must) -- no programmer-forced VMEM ping-pong.
        h = x_ref[...]                          # bf16
        for l in range(n_layers):               # unrolled at trace time
            w_ref = refs[1 + 2 * l]             # bf16 [in_pad_l, out_pad_l]
            b_ref = refs[2 + 2 * l]             # f32  [1, out_pad_l]
            # MXU matmul bf16 x bf16 -> f32 accumulate; bias add stays f32.
            y = jnp.dot(h, w_ref[...],
                        preferred_element_type=jnp.float32) + b_ref[...]
            if l + 1 < n_layers:
                h = y.astype(jnp.bfloat16)      # bf16 carry into next matmul
            else:
                o_ref[...] = y.astype(o_ref.dtype)   # last layer -> output tile

    return kernel


# ----------------------------------------------------------------------------
# Wrapper: tile the batch, single pallas_call, resident per-layer weights.
# ----------------------------------------------------------------------------
def lae_forward(x, ws, bs, *, out_dim, block_m=512):
    """Fused LAE forward.

    x  : [M, d_in] (any float dtype)
    ws : list of L weights, w_l [in_pad_l, out_pad_l] bf16, zero-padded,
         already transposed vs. PyTorch (y = x @ W + b)
    bs : list of L biases,  b_l [1, out_pad_l] f32, zero-padded
    Returns [M, out_dim] f32.
    """
    M, d_in = x.shape
    n_layers = len(ws)
    d_in_pad = ws[0].shape[0]
    d_out_pad = ws[-1].shape[1]

    tm = min(block_m, _round_up(M, 8))
    m_pad = _round_up(M, tm)

    # Stream x in bf16; only materialize a padded copy if padding is needed.
    x_bf = x.astype(jnp.bfloat16)
    if (m_pad, d_in_pad) != (M, d_in):
        x_in = jnp.zeros((m_pad, d_in_pad), jnp.bfloat16).at[:M, :d_in].set(x_bf)
    else:
        x_in = x_bf

    # VMEM budget from the actual footprint (weights are double-buffered by
    # the BlockSpec pipeline even with a constant index map).
    w_bytes = sum(int(w.size) * w.dtype.itemsize for w in ws)
    b_bytes = sum(int(b.size) * b.dtype.itemsize for b in bs)
    max_width = max(w.shape[1] for w in ws)
    stream_bytes = 2 * tm * d_in_pad * 2 + 2 * tm * d_out_pad * 4
    act_margin = 4 * tm * max_width * 4          # headroom for in-flight activations
    vmem_limit = int(max(32 << 20,               # never below the default scoped limit
                         min(2 * (w_bytes + b_bytes) + stream_bytes + act_margin
                             + (4 << 20), 128 << 20)))

    in_specs = [pl.BlockSpec((tm, d_in_pad), lambda i: (i, 0))]
    operands = [x_in]
    for w, b in zip(ws, bs):
        # Constant block index -> weights/biases stay resident in VMEM across
        # batch tiles; only x / out are re-DMA'd per grid step.
        in_specs.append(pl.BlockSpec(w.shape, lambda i: (0, 0)))
        in_specs.append(pl.BlockSpec(b.shape, lambda i: (0, 0)))
        operands += [w, b]

    out_pad = pl.pallas_call(
        _make_lae_kernel(n_layers),
        out_shape=jax.ShapeDtypeStruct((m_pad, d_out_pad), jnp.float32),
        grid_spec=pltpu.PrefetchScalarGridSpec(
            num_scalar_prefetch=0,
            grid=(m_pad // tm,),
            in_specs=in_specs,
            out_specs=pl.BlockSpec((tm, d_out_pad), lambda i: (i, 0)),
        ),
        compiler_params=pltpu.CompilerParams(
            dimension_semantics=("parallel",),   # batch tiles are independent
            vmem_limit_bytes=vmem_limit,
        ),
    )(*operands)

    if (m_pad, d_out_pad) == (M, out_dim):
        return out_pad                            # no extra XLA slice copy
    return out_pad[:M, :out_dim]


# ----------------------------------------------------------------------------
# Parameter construction (mirrors the PyTorch LAE layer layout).
# ----------------------------------------------------------------------------
def init_lae_params(key, input_dim, hidden_dim, latent_dim, n_hidden_layers,
                    dtype=jnp.float32):
    """Each entry is (W [in, out], b [out]) -- W already transposed vs PyTorch.
    Uses U(-1/sqrt(in), 1/sqrt(in)) like torch.nn.Linear's default init."""
    dims = []
    dims.append((input_dim, hidden_dim))                   # encoder_input_layer
    dims += [(hidden_dim, hidden_dim)] * n_hidden_layers   # encoder_hidden_layers
    dims.append((hidden_dim, latent_dim))                  # encoder_output_layer
    dims.append((latent_dim, hidden_dim))                  # decoder_input_layer
    dims += [(hidden_dim, hidden_dim)] * n_hidden_layers   # decoder_hidden_layers
    dims.append((hidden_dim, input_dim))                   # decoder_output_layer

    params = []
    for fan_in, fan_out in dims:
        key, kw, kb = jax.random.split(key, 3)
        bound = 1.0 / (fan_in ** 0.5)
        w = jax.random.uniform(kw, (fan_in, fan_out), dtype, -bound, bound)
        b = jax.random.uniform(kb, (fan_out,), dtype, -bound, bound)
        params.append((w, b))
    return params


def pack_params(params, *, lane=128, weight_dtype=jnp.bfloat16):
    """Per-layer packing: zero-pad each Linear to its own 128-rounded
    (in_pad, out_pad) -- NOT a common max-D square -- and keep biases f32.
    Chained layers share out_l == in_{l+1}, so padded widths stay consistent."""
    ws, bs = [], []
    for w, b in params:
        fi, fo = w.shape
        ip, op = _round_up(fi, lane), _round_up(fo, lane)
        wp = jnp.zeros((ip, op), weight_dtype).at[:fi, :fo].set(
            w.astype(weight_dtype))
        bp = jnp.zeros((1, op), jnp.float32).at[0, :fo].set(
            b.astype(jnp.float32))
        ws.append(wp)
        bs.append(bp)
    return ws, bs


# ----------------------------------------------------------------------------
# Pure-JAX reference with identical numerics (bf16 matmul, f32 accumulate/bias).
# Note: PyTorch's LAE is f32 end-to-end; bf16 weights are an intentional MXU
# choice here and match this reference, not bit-exact torch.
# ----------------------------------------------------------------------------
def lae_forward_ref(x, params):
    h = x.astype(jnp.float32)
    for w, b in params:
        h = jnp.dot(h.astype(jnp.bfloat16), w.astype(jnp.bfloat16),
                    preferred_element_type=jnp.float32) + b.astype(jnp.float32)
    return h


if __name__ == "__main__":
    # Small, deterministic example consistent with the module's constructor.
    input_dim, hidden_dim, latent_dim, n_hidden_layers = 16, 32, 8, 2
    batch = 512            # 2 batch tiles of 256 -> exercises the pipelined grid

    key = jax.random.PRNGKey(0)
    key, kx = jax.random.split(key)
    x = jax.random.normal(kx, (batch, input_dim), jnp.float32)

    params = init_lae_params(key, input_dim, hidden_dim, latent_dim,
                             n_hidden_layers)
    ws, bs = pack_params(params)

    fwd = jax.jit(functools.partial(lae_forward, out_dim=input_dim, block_m=256))
    out = jax.block_until_ready(fwd(x, ws, bs))
    ref = jax.block_until_ready(lae_forward_ref(x, params))

    assert out.shape == (batch, input_dim), out.shape
    assert jnp.allclose(out, ref, atol=1e-2, rtol=1e-2), "mismatch vs reference"

    print("KERNEL_OK")
</pallas_src>

<mosaic_0001>
module attributes {stable_mosaic.version = 11 : i64} {
  func.func @kernel(%arg0: i32, %arg1: memref<256x128xbf16, #tpu.memory_space<vmem>>, %arg2: memref<128x128xbf16, #tpu.memory_space<vmem>>, %arg3: memref<1x128xf32, #tpu.memory_space<vmem>>, %arg4: memref<128x128xbf16, #tpu.memory_space<vmem>>, %arg5: memref<1x128xf32, #tpu.memory_space<vmem>>, %arg6: memref<128x128xbf16, #tpu.memory_space<vmem>>, %arg7: memref<1x128xf32, #tpu.memory_space<vmem>>, %arg8: memref<128x128xbf16, #tpu.memory_space<vmem>>, %arg9: memref<1x128xf32, #tpu.memory_space<vmem>>, %arg10: memref<128x128xbf16, #tpu.memory_space<vmem>>, %arg11: memref<1x128xf32, #tpu.memory_space<vmem>>, %arg12: memref<128x128xbf16, #tpu.memory_space<vmem>>, %arg13: memref<1x128xf32, #tpu.memory_space<vmem>>, %arg14: memref<128x128xbf16, #tpu.memory_space<vmem>>, %arg15: memref<1x128xf32, #tpu.memory_space<vmem>>, %arg16: memref<128x128xbf16, #tpu.memory_space<vmem>>, %arg17: memref<1x128xf32, #tpu.memory_space<vmem>>, %arg18: memref<256x128xf32, #tpu.memory_space<vmem>>) attributes {dimension_semantics = [#tpu.dimension_semantics<parallel>], iteration_bounds = array<i64: 2>, scalar_prefetch = 0 : i64, scratch_operands = 0 : i64, tpu.core_type = #tpu.core_type<tc>, window_params = [{transform_indices = @transform_0, window_bounds = array<i64: 256, 128>}, {pipeline_mode = #tpu.pipeline_mode<synchronous>, transform_indices = @transform_1, window_bounds = array<i64: 128, 128>}, {pipeline_mode = #tpu.pipeline_mode<synchronous>, transform_indices = @transform_2, window_bounds = array<i64: 1, 128>}, {pipeline_mode = #tpu.pipeline_mode<synchronous>, transform_indices = @transform_3, window_bounds = array<i64: 128, 128>}, {pipeline_mode = #tpu.pipeline_mode<synchronous>, transform_indices = @transform_4, window_bounds = array<i64: 1, 128>}, {pipeline_mode = #tpu.pipeline_mode<synchronous>, transform_indices = @transform_5, window_bounds = array<i64: 128, 128>}, {pipeline_mode = #tpu.pipeline_mode<synchronous>, transform_indices = @transform_6, window_bounds = array<i64: 1, 128>}, {pipeline_mode = #tpu.pipeline_mode<synchronous>, transform_indices = @transform_7, window_bounds = array<i64: 128, 128>}, {pipeline_mode = #tpu.pipeline_mode<synchronous>, transform_indices = @transform_8, window_bounds = array<i64: 1, 128>}, {pipeline_mode = #tpu.pipeline_mode<synchronous>, transform_indices = @transform_9, window_bounds = array<i64: 128, 128>}, {pipeline_mode = #tpu.pipeline_mode<synchronous>, transform_indices = @transform_10, window_bounds = array<i64: 1, 128>}, {pipeline_mode = #tpu.pipeline_mode<synchronous>, transform_indices = @transform_11, window_bounds = array<i64: 128, 128>}, {pipeline_mode = #tpu.pipeline_mode<synchronous>, transform_indices = @transform_12, window_bounds = array<i64: 1, 128>}, {pipeline_mode = #tpu.pipeline_mode<synchronous>, transform_indices = @transform_13, window_bounds = array<i64: 128, 128>}, {pipeline_mode = #tpu.pipeline_mode<synchronous>, transform_indices = @transform_14, window_bounds = array<i64: 1, 128>}, {pipeline_mode = #tpu.pipeline_mode<synchronous>, transform_indices = @transform_15, window_bounds = array<i64: 128, 128>}, {pipeline_mode = #tpu.pipeline_mode<synchronous>, transform_indices = @transform_16, window_bounds = array<i64: 1, 128>}, {transform_indices = @transform_17, window_bounds = array<i64: 256, 128>}]} {
    %c0 = arith.constant 0 : index
    %c0_0 = arith.constant 0 : index
    %0 = vector.load %arg1[%c0, %c0_0] : memref<256x128xbf16, #tpu.memory_space<vmem>>, vector<256x128xbf16>
    %c0_1 = arith.constant 0 : index
    %c0_2 = arith.constant 0 : index
    %1 = vector.load %arg2[%c0_1, %c0_2] : memref<128x128xbf16, #tpu.memory_space<vmem>>, vector<128x128xbf16>
    %cst = arith.constant dense<0.000000e+00> : vector<256x128xf32>
    %2 = tpu.matmul %0, %1, %cst {dimension_numbers = #tpu.dot_dimension_numbers<[1], [0], [0], [1], [0, 0, 1, 1], [], []>} : vector<256x128xbf16>, vector<128x128xbf16>, vector<256x128xf32> -> vector<256x128xf32>
    %c0_3 = arith.constant 0 : index
    %c0_4 = arith.constant 0 : index
    %3 = vector.load %arg3[%c0_3, %c0_4] : memref<1x128xf32, #tpu.memory_space<vmem>>, vector<1x128xf32>
    %4 = vector.broadcast %3 : vector<1x128xf32> to vector<256x128xf32>
    %5 = arith.addf %2, %4 : vector<256x128xf32>
    %6 = arith.truncf %5 : vector<256x128xf32> to vector<256x128xbf16>
    %c0_5 = arith.constant 0 : index
    %c0_6 = arith.constant 0 : index
    %7 = vector.load %arg4[%c0_5, %c0_6] : memref<128x128xbf16, #tpu.memory_space<vmem>>, vector<128x128xbf16>
    %cst_7 = arith.constant dense<0.000000e+00> : vector<256x128xf32>
    %8 = tpu.matmul %6, %7, %cst_7 {dimension_numbers = #tpu.dot_dimension_numbers<[1], [0], [0], [1], [0, 0, 1, 1], [], []>} : vector<256x128xbf16>, vector<128x128xbf16>, vector<256x128xf32> -> vector<256x128xf32>
    %c0_8 = arith.constant 0 : index
    %c0_9 = arith.constant 0 : index
    %9 = vector.load %arg5[%c0_8, %c0_9] : memref<1x128xf32, #tpu.memory_space<vmem>>, vector<1x128xf32>
    %10 = vector.broadcast %9 : vector<1x128xf32> to vector<256x128xf32>
    %11 = arith.addf %8, %10 : vector<256x128xf32>
    %12 = arith.truncf %11 : vector<256x128xf32> to vector<256x128xbf16>
    %c0_10 = arith.constant 0 : index
    %c0_11 = arith.constant 0 : index
    %13 = vector.load %arg6[%c0_10, %c0_11] : memref<128x128xbf16, #tpu.memory_space<vmem>>, vector<128x128xbf16>
    %cst_12 = arith.constant dense<0.000000e+00> : vector<256x128xf32>
    %14 = tpu.matmul %12, %13, %cst_12 {dimension_numbers = #tpu.dot_dimension_numbers<[1], [0], [0], [1], [0, 0, 1, 1], [], []>} : vector<256x128xbf16>, vector<128x128xbf16>, vector<256x128xf32> -> vector<256x128xf32>
    %c0_13 = arith.constant 0 : index
    %c0_14 = arith.constant 0 : index
    %15 = vector.load %arg7[%c0_13, %c0_14] : memref<1x128xf32, #tpu.memory_space<vmem>>, vector<1x128xf32>
    %16 = vector.broadcast %15 : vector<1x128xf32> to vector<256x128xf32>
    %17 = arith.addf %14, %16 : vector<256x128xf32>
    %18 = arith.truncf %17 : vector<256x128xf32> to vector<256x128xbf16>
    %c0_15 = arith.constant 0 : index
    %c0_16 = arith.constant 0 : index
    %19 = vector.load %arg8[%c0_15, %c0_16] : memref<128x128xbf16, #tpu.memory_space<vmem>>, vector<128x128xbf16>
    %cst_17 = arith.constant dense<0.000000e+00> : vector<256x128xf32>
    %20 = tpu.matmul %18, %19, %cst_17 {dimension_numbers = #tpu.dot_dimension_numbers<[1], [0], [0], [1], [0, 0, 1, 1], [], []>} : vector<256x128xbf16>, vector<128x128xbf16>, vector<256x128xf32> -> vector<256x128xf32>
    %c0_18 = arith.constant 0 : index
    %c0_19 = arith.constant 0 : index
    %21 = vector.load %arg9[%c0_18, %c0_19] : memref<1x128xf32, #tpu.memory_space<vmem>>, vector<1x128xf32>
    %22 = vector.broadcast %21 : vector<1x128xf32> to vector<256x128xf32>
    %23 = arith.addf %20, %22 : vector<256x128xf32>
    %24 = arith.truncf %23 : vector<256x128xf32> to vector<256x128xbf16>
    %c0_20 = arith.constant 0 : index
    %c0_21 = arith.constant 0 : index
    %25 = vector.load %arg10[%c0_20, %c0_21] : memref<128x128xbf16, #tpu.memory_space<vmem>>, vector<128x128xbf16>
    %cst_22 = arith.constant dense<0.000000e+00> : vector<256x128xf32>
    %26 = tpu.matmul %24, %25, %cst_22 {dimension_numbers = #tpu.dot_dimension_numbers<[1], [0], [0], [1], [0, 0, 1, 1], [], []>} : vector<256x128xbf16>, vector<128x128xbf16>, vector<256x128xf32> -> vector<256x128xf32>
    %c0_23 = arith.constant 0 : index
    %c0_24 = arith.constant 0 : index
    %27 = vector.load %arg11[%c0_23, %c0_24] : memref<1x128xf32, #tpu.memory_space<vmem>>, vector<1x128xf32>
    %28 = vector.broadcast %27 : vector<1x128xf32> to vector<256x128xf32>
    %29 = arith.addf %26, %28 : vector<256x128xf32>
    %30 = arith.truncf %29 : vector<256x128xf32> to vector<256x128xbf16>
    %c0_25 = arith.constant 0 : index
    %c0_26 = arith.constant 0 : index
    %31 = vector.load %arg12[%c0_25, %c0_26] : memref<128x128xbf16, #tpu.memory_space<vmem>>, vector<128x128xbf16>
    %cst_27 = arith.constant dense<0.000000e+00> : vector<256x128xf32>
    %32 = tpu.matmul %30, %31, %cst_27 {dimension_numbers = #tpu.dot_dimension_numbers<[1], [0], [0], [1], [0, 0, 1, 1], [], []>} : vector<256x128xbf16>, vector<128x128xbf16>, vector<256x128xf32> -> vector<256x128xf32>
    %c0_28 = arith.constant 0 : index
    %c0_29 = arith.constant 0 : index
    %33 = vector.load %arg13[%c0_28, %c0_29] : memref<1x128xf32, #tpu.memory_space<vmem>>, vector<1x128xf32>
    %34 = vector.broadcast %33 : vector<1x128xf32> to vector<256x128xf32>
    %35 = arith.addf %32, %34 : vector<256x128xf32>
    %36 = arith.truncf %35 : vector<256x128xf32> to vector<256x128xbf16>
    %c0_30 = arith.constant 0 : index
    %c0_31 = arith.constant 0 : index
    %37 = vector.load %arg14[%c0_30, %c0_31] : memref<128x128xbf16, #tpu.memory_space<vmem>>, vector<128x128xbf16>
    %cst_32 = arith.constant dense<0.000000e+00> : vector<256x128xf32>
    %38 = tpu.matmul %36, %37, %cst_32 {dimension_numbers = #tpu.dot_dimension_numbers<[1], [0], [0], [1], [0, 0, 1, 1], [], []>} : vector<256x128xbf16>, vector<128x128xbf16>, vector<256x128xf32> -> vector<256x128xf32>
    %c0_33 = arith.constant 0 : index
    %c0_34 = arith.constant 0 : index
    %39 = vector.load %arg15[%c0_33, %c0_34] : memref<1x128xf32, #tpu.memory_space<vmem>>, vector<1x128xf32>
    %40 = vector.broadcast %39 : vector<1x128xf32> to vector<256x128xf32>
    %41 = arith.addf %38, %40 : vector<256x128xf32>
    %42 = arith.truncf %41 : vector<256x128xf32> to vector<256x128xbf16>
    %c0_35 = arith.constant 0 : index
    %c0_36 = arith.constant 0 : index
    %43 = vector.load %arg16[%c0_35, %c0_36] : memref<128x128xbf16, #tpu.memory_space<vmem>>, vector<128x128xbf16>
    %cst_37 = arith.constant dense<0.000000e+00> : vector<256x128xf32>
    %44 = tpu.matmul %42, %43, %cst_37 {dimension_numbers = #tpu.dot_dimension_numbers<[1], [0], [0], [1], [0, 0, 1, 1], [], []>} : vector<256x128xbf16>, vector<128x128xbf16>, vector<256x128xf32> -> vector<256x128xf32>
    %c0_38 = arith.constant 0 : index
    %c0_39 = arith.constant 0 : index
    %45 = vector.load %arg17[%c0_38, %c0_39] : memref<1x128xf32, #tpu.memory_space<vmem>>, vector<1x128xf32>
    %46 = vector.broadcast %45 : vector<1x128xf32> to vector<256x128xf32>
    %47 = arith.addf %44, %46 : vector<256x128xf32>
    %c0_40 = arith.constant 0 : index
    %c0_41 = arith.constant 0 : index
    %48 = vector.load %arg18[%c0_40, %c0_41] : memref<256x128xf32, #tpu.memory_space<vmem>>, vector<256x128xf32>
    tpu.vector_store %arg18[%c0_40, %c0_41], %47 {strides = array<i32>} : memref<256x128xf32, #tpu.memory_space<vmem>>, vector<256x128xf32>,
    return
  }
  func.func @transform_0(%arg0: i32) -> (i32, i32) {
    %c0_i32 = arith.constant 0 : i32
    %c0_i32_0 = arith.constant 0 : i32
    return %arg0, %c0_i32 : i32, i32
  }
  func.func @transform_1(%arg0: i32) -> (i32, i32) {
    %c0_i32 = arith.constant 0 : i32
    %c0_i32_0 = arith.constant 0 : i32
    %c0_i32_1 = arith.constant 0 : i32
    return %c0_i32, %c0_i32_0 : i32, i32
  }
  func.func @transform_2(%arg0: i32) -> (i32, i32) {
    %c0_i32 = arith.constant 0 : i32
    %c0_i32_0 = arith.constant 0 : i32
    %c0_i32_1 = arith.constant 0 : i32
    return %c0_i32, %c0_i32_0 : i32, i32
  }
  func.func @transform_3(%arg0: i32) -> (i32, i32) {
    %c0_i32 = arith.constant 0 : i32
    %c0_i32_0 = arith.constant 0 : i32
    %c0_i32_1 = arith.constant 0 : i32
    return %c0_i32, %c0_i32_0 : i32, i32
  }
  func.func @transform_4(%arg0: i32) -> (i32, i32) {
    %c0_i32 = arith.constant 0 : i32
    %c0_i32_0 = arith.constant 0 : i32
    %c0_i32_1 = arith.constant 0 : i32
    return %c0_i32, %c0_i32_0 : i32, i32
  }
  func.func @transform_5(%arg0: i32) -> (i32, i32) {
    %c0_i32 = arith.constant 0 : i32
    %c0_i32_0 = arith.constant 0 : i32
    %c0_i32_1 = arith.constant 0 : i32
    return %c0_i32, %c0_i32_0 : i32, i32
  }
  func.func @transform_6(%arg0: i32) -> (i32, i32) {
    %c0_i32 = arith.constant 0 : i32
    %c0_i32_0 = arith.constant 0 : i32
    %c0_i32_1 = arith.constant 0 : i32
    return %c0_i32, %c0_i32_0 : i32, i32
  }
  func.func @transform_7(%arg0: i32) -> (i32, i32) {
    %c0_i32 = arith.constant 0 : i32
    %c0_i32_0 = arith.constant 0 : i32
    %c0_i32_1 = arith.constant 0 : i32
    return %c0_i32, %c0_i32_0 : i32, i32
  }
  func.func @transform_8(%arg0: i32) -> (i32, i32) {
    %c0_i32 = arith.constant 0 : i32
    %c0_i32_0 = arith.constant 0 : i32
    %c0_i32_1 = arith.constant 0 : i32
    return %c0_i32, %c0_i32_0 : i32, i32
  }
  func.func @transform_9(%arg0: i32) -> (i32, i32) {
    %c0_i32 = arith.constant 0 : i32
    %c0_i32_0 = arith.constant 0 : i32
    %c0_i32_1 = arith.constant 0 : i32
    return %c0_i32, %c0_i32_0 : i32, i32
  }
  func.func @transform_10(%arg0: i32) -> (i32, i32) {
    %c0_i32 = arith.constant 0 : i32
    %c0_i32_0 = arith.constant 0 : i32
    %c0_i32_1 = arith.constant 0 : i32
    return %c0_i32, %c0_i32_0 : i32, i32
  }
  func.func @transform_11(%arg0: i32) -> (i32, i32) {
    %c0_i32 = arith.constant 0 : i32
    %c0_i32_0 = arith.constant 0 : i32
    %c0_i32_1 = arith.constant 0 : i32
    return %c0_i32, %c0_i32_0 : i32, i32
  }
  func.func @transform_12(%arg0: i32) -> (i32, i32) {
    %c0_i32 = arith.constant 0 : i32
    %c0_i32_0 = arith.constant 0 : i32
    %c0_i32_1 = arith.constant 0 : i32
    return %c0_i32, %c0_i32_0 : i32, i32
  }
  func.func @transform_13(%arg0: i32) -> (i32, i32) {
    %c0_i32 = arith.constant 0 : i32
    %c0_i32_0 = arith.constant 0 : i32
    %c0_i32_1 = arith.constant 0 : i32
    return %c0_i32, %c0_i32_0 : i32, i32
  }
  func.func @transform_14(%arg0: i32) -> (i32, i32) {
    %c0_i32 = arith.constant 0 : i32
    %c0_i32_0 = arith.constant 0 : i32
    %c0_i32_1 = arith.constant 0 : i32
    return %c0_i32, %c0_i32_0 : i32, i32
  }
  func.func @transform_15(%arg0: i32) -> (i32, i32) {
    %c0_i32 = arith.constant 0 : i32
    %c0_i32_0 = arith.constant 0 : i32
    %c0_i32_1 = arith.constant 0 : i32
    return %c0_i32, %c0_i32_0 : i32, i32
  }
  func.func @transform_16(%arg0: i32) -> (i32, i32) {
    %c0_i32 = arith.constant 0 : i32
    %c0_i32_0 = arith.constant 0 : i32
    %c0_i32_1 = arith.constant 0 : i32
    return %c0_i32, %c0_i32_0 : i32, i32
  }
  func.func @transform_17(%arg0: i32) -> (i32, i32) {
    %c0_i32 = arith.constant 0 : i32
    %c0_i32_0 = arith.constant 0 : i32
    return %arg0, %c0_i32 : i32, i32
  }
}

</mosaic_0001>

<bundles_post_ra>
// kernel: lae_forward.1
= control target key start
LH: loop header
LB: loop body
LE: loop exit
PB: predicated region body
PF: predicated region fallthrough
CT: control target
= control target key end

     0   :  { %s3598_s24 = smov 0   ;;  %s4159_s0 = inlined_call_operand.vmem [shape: bf16[512,128], index: 0, kind: input, shape index: {}]   ;;  %s4160_s1 = inlined_call_operand.vmem [shape: bf16[128,128], index: 1, kind: input, shape index: {}]   ;;  %s4161_s2 = inlined_call_operand.vmem [shape: f32[1,128], index: 2, kind: input, shape index: {}]   ;;  %s4162_s3 = inlined_call_operand.vmem [shape: bf16[128,128], index: 3, kind: input, shape index: {}]   ;;  %s4163_s4 = inlined_call_operand.vmem [shape: f32[1,128], index: 4, kind: input, shape index: {}]   ;;  %s4164_s5 = inlined_call_operand.vmem [shape: bf16[128,128], index: 5, kind: input, shape index: {}]   ;;  %s4165_s6 = inlined_call_operand.vmem [shape: f32[1,128], index: 6, kind: input, shape index: {}]   ;;  %s4166_s7 = inlined_call_operand.vmem [shape: bf16[128,128], index: 7, kind: input, shape index: {}]   ;;  %s4167_s8 = inlined_call_operand.vmem [shape: f32[1,128], index: 8, kind: input, shape index: {}]   ;;  %s4168_s9 = inlined_call_operand.vmem [shape: bf16[128,128], index: 9, kind: input, shape index: {}]   ;;  %s4169_s10 = inlined_call_operand.vmem [shape: f32[1,128], index: 10, kind: input, shape index: {}]   ;;  %s4170_s11 = inlined_call_operand.vmem [shape: bf16[128,128], index: 11, kind: input, shape index: {}]   ;;  %s4171_s12 = inlined_call_operand.vmem [shape: f32[1,128], index: 12, kind: input, shape index: {}]   ;;  %s4172_s13 = inlined_call_operand.vmem [shape: bf16[128,128], index: 13, kind: input, shape index: {}]   ;;  %s4173_s14 = inlined_call_operand.vmem [shape: f32[1,128], index: 14, kind: input, shape index: {}]   ;;  %s4174_s15 = inlined_call_operand.vmem [shape: bf16[128,128], index: 15, kind: input, shape index: {}]   ;;  %s4175_s16 = inlined_call_operand.vmem [shape: f32[1,128], index: 16, kind: input, shape index: {}]   ;;  %s4176_s17 = inlined_call_operand.vmem [shape: f32[512,128], index: 17, kind: output, shape index: {}]  }
   0x1   :  { %4178 = sst [smem:[#allocation2_spill]] %s4159_s0 }
   0x2   :  { %4179 = sst [smem:[#allocation3_spill]] %s4160_s1 }
   0x3 LB: > { %s2737_s25 = sadd.s32 4294967295, %s3506_s24   ;;  %p2741_p0 = scmp.ge.s32.totalorder %s3506_s24, 1  ;;  %s3506_s24 = sphi %s3598_s24, %s27_s24  }
   0x4   : > { %p488_p1 = scmp.lt.s32.totalorder %s3506_s24, 3 }
   0x6   : > { %p489_p2 = pnand %p2741_p0, %p488_p1 }
   0x7   : > { %s4180_s28 = sld [smem:[#allocation3_spill]] (!%p489_p2)  ;;  %s2742_s29 = sshll.u32 (!%p489_p2), %s2737_s25, 5 }
   0x8   : > { %492 = sbr.rel (%p489_p2) target bundleno = 1732 (0x6c4), region = 88  ;;  %p541_p3 = scmp.lt.s32.totalorder (!%p489_p2), %s2742_s29, 63 }
   0x9   : > { %s4181_s22 = sld [smem:[#allocation2_spill]] (!%p489_p2) }
   0xd   : > { %v3420_v0 = vld [vmem:[%s4180_s28 + $0x38] sm:$0xff]   ;;  %v3421_v1 = vld [vmem:[%s4180_s28 + $0x30] sm:$0xff]   ;;  %s4183_s29 = smov (!%p541_p3, %s2742_s29), 63  ;;  %v3422_v2 = vld [vmem:[%s4180_s28 + $0x28] sm:$0xff]  }
   0xe   : > { %3028 = vmatprep.subr.bf16.mxu0 %v3420_v0  ;;  %s2743_s1 = sshll.u32 %s4183_s29, 2  ;;  %v3423_v3 = vld [vmem:[%s4180_s28 + $0x20] sm:$0xff]   ;;  %v3424_v5 = vld [vmem:[%s4180_s28 + $0x18] sm:$0xff]   ;;  %v3425_v6 = vld [vmem:[%s4180_s28 + $0x10] sm:$0xff]   ;;  %s2745_s18 = sshll.u32 %s4183_s29, 3 }
   0xf   : > { %3029 = vmatpush3.bf16.msra.mxu0 %v3420_v0  ;;  %s3621_s23 = scalar_lea.vmem %s4181_s22, %s2743_s1  ;;  %v3426_v7 = vld [vmem:[%s4180_s28 + $0x8] sm:$0xff]   ;;  %v3427_v8 = vld [vmem:[%s4180_s28] sm:$0xff]   ;;  %v3444_v9 = vld [vmem:[%s4162_s3 + $0x38] sm:$0xff]   ;;  %s4090_s22 = scalar_lea.vmem %s4176_s17, %s2745_s18 }
  0x10   : > { %3030 = vmatprep.subr.bf16.mxu0 %v3421_v1  ;;  %v3428_v4 = vld [vmem:[%s3621_s23] sm:$0xff]   ;;  %v3445_v10 = vld [vmem:[%s4162_s3 + $0x30] sm:$0xff]   ;;  %3076 = vmatprep.subr.bf16.mxu1 %v3444_v9  ;;  %v3429_v11 = vld [vmem:[%s3621_s23 + $0x8] sm:$0xff]  }
  0x11   : > { %3044 = vmatprep.mubr.bf16.mxu0 %v3428_v4  ;;  %3077 = vmatpush3.bf16.msra.mxu1 %v3444_v9  ;;  %v3446_v12 = vld [vmem:[%s4162_s3 + $0x28] sm:$0xff]   ;;  %v3430_v13 = vld [vmem:[%s3621_s23 + $0x10] sm:$0xff]   ;;  %v3447_v14 = vld [vmem:[%s4162_s3 + $0x20] sm:$0xff]  }
  0x12   : > { %3078 = vmatprep.subr.bf16.mxu1 %v3445_v10  ;;  %v3448_v15 = vld [vmem:[%s4162_s3 + $0x18] sm:$0xff]   ;;  %v3432_v17 = vld [vmem:[%s3621_s23 + $0x20] sm:$0xff]   ;;  %v3433_v18 = vld [vmem:[%s3621_s23 + $0x28] sm:$0xff]  }
  0x13   : > { %3031 = vmatpush3.bf16.msra.mxu0 %v3421_v1  ;;  %v3431_v16 = vld [vmem:[%s3621_s23 + $0x18] sm:$0xff]   ;;  %v3434_v19 = vld [vmem:[%s3621_s23 + $0x30] sm:$0xff]   ;;  %v3436_v21 = vld [vmem:[%s3621_s23 + $0x40] sm:$0xff]  }
  0x14   : > { %3032 = vmatprep.subr.bf16.mxu0 %v3422_v2  ;;  %v3435_v20 = vld [vmem:[%s3621_s23 + $0x38] sm:$0xff]   ;;  %v3437_v22 = vld [vmem:[%s3621_s23 + $0x48] sm:$0xff]   ;;  %v3438_v23 = vld [vmem:[%s3621_s23 + $0x50] sm:$0xff]  }
  0x15   : > { %3079 = vmatpush3.bf16.msra.mxu1 %v3445_v10  ;;  %v3439_v24 = vld [vmem:[%s3621_s23 + $0x58] sm:$0xff]   ;;  %v3440_v25 = vld [vmem:[%s3621_s23 + $0x60] sm:$0xff]   ;;  %v3441_v26 = vld [vmem:[%s3621_s23 + $0x68] sm:$0xff]  }
  0x16   : > { %3080 = vmatprep.subr.bf16.mxu1 %v3446_v12  ;;  %v3442_v27 = vld [vmem:[%s3621_s23 + $0x70] sm:$0xff]   ;;  %v3443_v28 = vld [vmem:[%s3621_s23 + $0x78] sm:$0xff]   ;;  %v3450_v30 = vld [vmem:[%s4162_s3 + $0x8] sm:$0xff]  }
  0x17   : > { %3033 = vmatpush3.bf16.msra.mxu0 %v3422_v2  ;;  %v3449_v29 = vld [vmem:[%s4162_s3 + $0x10] sm:$0xff]   ;;  %v3451_v31 = vld [vmem:[%s4162_s3] sm:$0xff]   ;;  %v3452_v32 = vld [vmem:[%s4164_s5 + $0x38] sm:$0xff]  }
  0x18   : > { %3034 = vmatprep.subr.bf16.mxu0 %v3423_v3  ;;  %v3453_v33 = vld [vmem:[%s4164_s5 + $0x30] sm:$0xff]   ;;  %v3454_v34 = vld [vmem:[%s4164_s5 + $0x28] sm:$0xff]   ;;  %v3455_v35 = vld [vmem:[%s4164_s5 + $0x20] sm:$0xff]  }
  0x19   : > { %3081 = vmatpush3.bf16.msra.mxu1 %v3446_v12  ;;  %v3456_v36 = vld [vmem:[%s4164_s5 + $0x18] sm:$0xff]   ;;  %v3457_v37 = vld [vmem:[%s4164_s5 + $0x10] sm:$0xff]   ;;  %v3458_v38 = vld [vmem:[%s4164_s5 + $0x8] sm:$0xff]  }
  0x1a   : > { %3082 = vmatprep.subr.bf16.mxu1 %v3447_v14  ;;  %v3702_v42 = vld [vmem:[%s4161_s2] ss:$0 sm:$0xff] }
  0x1b   : > { %3035 = vmatpush3.bf16.msra.mxu0 %v3423_v3 }
  0x1c   : > { %3036 = vmatprep.subr.bf16.mxu0 %v3424_v5 }
  0x1d   : > { %3083 = vmatpush3.bf16.msra.mxu1 %v3447_v14 }
  0x1e   : > { %3084 = vmatprep.subr.bf16.mxu1 %v3448_v15 }
  0x1f   : > { %3037 = vmatpush3.bf16.msra.mxu0 %v3424_v5 }
  0x20   : > { %3038 = vmatprep.subr.bf16.mxu0 %v3425_v6 }
  0x21   : > { %3085 = vmatpush3.bf16.msra.mxu1 %v3448_v15 }
  0x22   : > { %3086 = vmatprep.subr.bf16.mxu1 %v3449_v29 }
  0x23   : > { %3039 = vmatpush3.bf16.msra.mxu0 %v3425_v6 }
  0x24   : > { %3040 = vmatprep.subr.bf16.mxu0 %v3426_v7 }
  0x25   : > { %3087 = vmatpush3.bf16.msra.mxu1 %v3449_v29 }
  0x26   : > { %3088 = vmatprep.subr.bf16.mxu1 %v3450_v30 }
  0x27   : > { %3041 = vmatpush3.bf16.msra.mxu0 %v3426_v7 }
  0x28   : > { %3042 = vmatprep.subr.bf16.mxu0 %v3427_v8 }
  0x29   : > { %3089 = vmatpush3.bf16.msra.mxu1 %v3450_v30 }
  0x2a   : > { %3090 = vmatprep.subr.bf16.mxu1 %v3451_v31 }
  0x2b   : > { %3043 = vmatpush3.bf16.msra.mxu0 %v3427_v8 }
  0x2c   : > { %3124 = vmatprep.subr.bf16.mxu0 %v3452_v32 }
  0x2d   : > { %3091 = vmatpush3.bf16.msra.mxu1 %v3451_v31 }
  0x2e   : > { %3045 = vmatmul.mubr.bf16.vlgmr.msra.gmra.mxu0 %v3429_v11 }
  0x2f   : > { %3048 = vmatprep.mubr.bf16.mxu0 %v3430_v13  ;;  %3125 = vmatpush3.bf16.msra.mxu0 %v3452_v32 }
  0x30   : > { %3126 = vmatprep.subr.bf16.mxu0 %v3453_v33 }
  0x33   : > { %3127 = vmatpush3.bf16.msra.mxu0 %v3453_v33 }
  0x34   : > { %3128 = vmatprep.subr.bf16.mxu0 %v3454_v34 }
  0x36   : > { %3049 = vmatmul.mubr.bf16.gmra.mxu0 %v3431_v16 }
  0x37   : > { %3052 = vmatprep.mubr.bf16.mxu0 %v3432_v17  ;;  %3129 = vmatpush3.bf16.msra.mxu0 %v3454_v34 }
  0x38   : > { %3130 = vmatprep.subr.bf16.mxu0 %v3455_v35 }
  0x3b   : > { %3131 = vmatpush3.bf16.msra.mxu0 %v3455_v35 }
  0x3c   : > { %3132 = vmatprep.subr.bf16.mxu0 %v3456_v36 }
  0x3e   : > { %3053 = vmatmul.mubr.bf16.gmra.mxu0 %v3433_v18 }
  0x3f   : > { %3056 = vmatprep.mubr.bf16.mxu0 %v3434_v19  ;;  %3133 = vmatpush3.bf16.msra.mxu0 %v3456_v36 }
  0x40   : > { %3134 = vmatprep.subr.bf16.mxu0 %v3457_v37 }
  0x43   : > { %3135 = vmatpush3.bf16.msra.mxu0 %v3457_v37 }
  0x44   : > { %3136 = vmatprep.subr.bf16.mxu0 %v3458_v38 }
  0x46   : > { %3057 = vmatmul.mubr.bf16.gmra.mxu0 %v3435_v20 }
  0x47   : > { %3060 = vmatprep.mubr.bf16.mxu0 %v3436_v21  ;;  %3137 = vmatpush3.bf16.msra.mxu0 %v3458_v38 }
  0x4e   : > { %3061 = vmatmul.mubr.bf16.gmra.mxu0 %v3437_v22 }
  0x4f   : > { %3064 = vmatprep.mubr.bf16.mxu0 %v3438_v23 }
  0x56   : > { %3065 = vmatmul.mubr.bf16.gmra.mxu0 %v3439_v24 }
  0x57   : > { %3068 = vmatprep.mubr.bf16.mxu0 %v3440_v25 }
  0x5e   : > { %3069 = vmatmul.mubr.bf16.gmra.mxu0 %v3441_v26 }
  0x5f   : > { %3072 = vmatprep.mubr.bf16.mxu0 %v3442_v27 }
  0x66   : > { %3073 = vmatmul.mubr.bf16.gmra.mxu0 %v3443_v28 }
  0xee   : > { %v3046_v39 = vpop.f32.mrf.mxu0 }
  0xef   : > { %v795_v47 = vadd.f32 %v3046_v39, %v3702_v42 }
  0xf0   : > { %v786_v40 = vpop.f32.mrf.mxu0 }
  0xf1   : > { %v787_v45 = vadd.f32 %v3702_v42, %v786_v40 }
  0xf2   : > { %v3047_v41 = vpop.f32.mrf.mxu0 }
  0xf3   : > { %v798_v43 = vadd.f32 %v3047_v41, %v3702_v42 }
  0xf4   : > { %v789_v44 = vpop.f32.mrf.mxu0 }
  0xf5   : > { %v790_v46 = vadd.f32 %v3702_v42, %v789_v44  ;;  %v914_v50 = vpack.c.bf16 %v798_v43, %v795_v47 }
  0xf6   : > { %v3050_v48 = vpop.f32.mrf.mxu0 }
  0xf7   : > { %v913_v49 = vpack.c.bf16 %v790_v46, %v787_v45  ;;  %v811_v57 = vadd.f32 %v3050_v48, %v3702_v42 }
  0xf8   : > { %v802_v51 = vpop.f32.mrf.mxu0 }
  0xf9   : > { %3092 = vmatprep.mubr.bf16.mxu1 %v913_v49  ;;  %v803_v55 = vadd.f32 %v3702_v42, %v802_v51 }
  0xfa   : > { %v3051_v52 = vpop.f32.mrf.mxu0  ;;  %3093 = vmatmul.mubr.bf16.vlgmr.msra.gmra.mxu1 %v914_v50 }
  0xfb   : > { %v814_v53 = vadd.f32 %v3051_v52, %v3702_v42 }
  0xfc   : > { %v805_v54 = vpop.f32.mrf.mxu0 }
  0xfd   : > { %v806_v56 = vadd.f32 %v3702_v42, %v805_v54  ;;  %v916_v60 = vpack.c.bf16 %v814_v53, %v811_v57  ;;  %v3459_v57 = vld [vmem:[%s4164_s5] sm:$0xff]  }
  0xfe   : > { %v3054_v58 = vpop.f32.mrf.mxu0  ;;  %3138 = vmatprep.subr.bf16.mxu0 %v3459_v57 }
  0xff   : > { %v915_v59 = vpack.c.bf16 %v806_v56, %v803_v55  ;;  %v827_v3 = vadd.f32 %v3054_v58, %v3702_v42  ;;  %3139 = vmatpush3.bf16.msra.mxu0 %v3459_v57  ;;  %v3460_v58 = vld [vmem:[%s4166_s7 + $0x38] sm:$0xff]  }
 0x100   : > { %v818_v61 = vpop.f32.mrf.mxu0  ;;  %3172 = vmatprep.subr.bf16.mxu1 %v3460_v58 }
 0x101   : > { %3096 = vmatprep.mubr.bf16.mxu1 %v915_v59  ;;  %v819_v1 = vadd.f32 %v3702_v42, %v818_v61  ;;  %v3461_v59 = vld [vmem:[%s4166_s7 + $0x30] sm:$0xff]   ;;  %3173 = vmatpush3.bf16.msra.mxu1 %v3460_v58  ;;  %v3464_v61 = vld [vmem:[%s4166_s7 + $0x18] sm:$0xff]  }
 0x102   : > { %v3055_v62 = vpop.f32.mrf.mxu0  ;;  %3097 = vmatmul.mubr.bf16.gmra.mxu1 %v916_v60  ;;  %3174 = vmatprep.subr.bf16.mxu1 %v3461_v59  ;;  %v3463_v60 = vld [vmem:[%s4166_s7 + $0x20] sm:$0xff]  }
 0x103   : > { %v830_v63 = vadd.f32 %v3055_v62, %v3702_v42  ;;  %v3465_v62 = vld [vmem:[%s4166_s7 + $0x10] sm:$0xff]  }
 0x104   : > { %v821_v0 = vpop.f32.mrf.mxu0 }
 0x105   : > { %v822_v2 = vadd.f32 %v3702_v42, %v821_v0  ;;  %v918_v6 = vpack.c.bf16 %v830_v63, %v827_v3  ;;  %3175 = vmatpush3.bf16.msra.mxu1 %v3461_v59  ;;  %v3466_v63 = vld [vmem:[%s4166_s7 + $0x8] sm:$0xff]   ;;  %v3763_v3 = vld [vmem:[%s4163_s4] ss:$0 sm:$0xff] }
 0x106   : > { %v3058_v4 = vpop.f32.mrf.mxu0 }
 0x107   : > { %v917_v5 = vpack.c.bf16 %v822_v2, %v819_v1  ;;  %v843_v13 = vadd.f32 %v3058_v4, %v3702_v42 }
 0x108   : > { %v834_v7 = vpop.f32.mrf.mxu0 }
 0x109   : > { %3100 = vmatprep.mubr.bf16.mxu1 %v917_v5  ;;  %v835_v11 = vadd.f32 %v3702_v42, %v834_v7 }
 0x10a   : > { %v3059_v8 = vpop.f32.mrf.mxu0  ;;  %3101 = vmatmul.mubr.bf16.gmra.mxu1 %v918_v6 }
 0x10b   : > { %v846_v9 = vadd.f32 %v3059_v8, %v3702_v42 }
 0x10c   : > { %v837_v10 = vpop.f32.mrf.mxu0 }
 0x10d   : > { %v838_v12 = vadd.f32 %v3702_v42, %v837_v10  ;;  %v920_v16 = vpack.c.bf16 %v846_v9, %v843_v13 }
 0x10e   : > { %v3062_v14 = vpop.f32.mrf.mxu0 }
 0x10f   : > { %v919_v15 = vpack.c.bf16 %v838_v12, %v835_v11  ;;  %v859_v23 = vadd.f32 %v3062_v14, %v3702_v42 }
 0x110   : > { %v850_v17 = vpop.f32.mrf.mxu0 }
 0x111   : > { %3104 = vmatprep.mubr.bf16.mxu1 %v919_v15  ;;  %v851_v21 = vadd.f32 %v3702_v42, %v850_v17 }
 0x112   : > { %v3063_v18 = vpop.f32.mrf.mxu0  ;;  %3105 = vmatmul.mubr.bf16.gmra.mxu1 %v920_v16 }
 0x113   : > { %v862_v19 = vadd.f32 %v3063_v18, %v3702_v42 }
 0x114   : > { %v853_v20 = vpop.f32.mrf.mxu0 }
 0x115   : > { %v854_v22 = vadd.f32 %v3702_v42, %v853_v20  ;;  %v922_v26 = vpack.c.bf16 %v862_v19, %v859_v23 }
 0x116   : > { %v3066_v24 = vpop.f32.mrf.mxu0 }
 0x117   : > { %v921_v25 = vpack.c.bf16 %v854_v22, %v851_v21  ;;  %v875_v33 = vadd.f32 %v3066_v24, %v3702_v42 }
 0x118   : > { %v866_v27 = vpop.f32.mrf.mxu0 }
 0x119   : > { %3108 = vmatprep.mubr.bf16.mxu1 %v921_v25  ;;  %v867_v31 = vadd.f32 %v3702_v42, %v866_v27 }
 0x11a   : > { %v3067_v28 = vpop.f32.mrf.mxu0  ;;  %3109 = vmatmul.mubr.bf16.gmra.mxu1 %v922_v26 }
 0x11b   : > { %v878_v29 = vadd.f32 %v3067_v28, %v3702_v42 }
 0x11c   : > { %v869_v30 = vpop.f32.mrf.mxu0 }
 0x11d   : > { %v870_v32 = vadd.f32 %v3702_v42, %v869_v30  ;;  %v924_v36 = vpack.c.bf16 %v878_v29, %v875_v33 }
 0x11e   : > { %v3070_v34 = vpop.f32.mrf.mxu0 }
 0x11f   : > { %v923_v35 = vpack.c.bf16 %v870_v32, %v867_v31  ;;  %v891_v44 = vadd.f32 %v3070_v34, %v3702_v42 }
 0x120   : > { %v882_v37 = vpop.f32.mrf.mxu0 }
 0x121   : > { %3112 = vmatprep.mubr.bf16.mxu1 %v923_v35  ;;  %v883_v41 = vadd.f32 %v3702_v42, %v882_v37 }
 0x122   : > { %v3071_v38 = vpop.f32.mrf.mxu0  ;;  %3113 = vmatmul.mubr.bf16.gmra.mxu1 %v924_v36 }
 0x123   : > { %v894_v39 = vadd.f32 %v3071_v38, %v3702_v42 }
 0x124   : > { %v885_v40 = vpop.f32.mrf.mxu0 }
 0x125   : > { %v886_v43 = vadd.f32 %v3702_v42, %v885_v40  ;;  %v926_v47 = vpack.c.bf16 %v894_v39, %v891_v44 }
 0x126   : > { %v3074_v45 = vpop.f32.mrf.mxu0 }
 0x127   : > { %v925_v46 = vpack.c.bf16 %v886_v43, %v883_v41  ;;  %v907_v54 = vadd.f32 %v3074_v45, %v3702_v42 }
 0x128   : > { %v898_v48 = vpop.f32.mrf.mxu0 }
 0x129   : > { %3116 = vmatprep.mubr.bf16.mxu1 %v925_v46  ;;  %v899_v52 = vadd.f32 %v3702_v42, %v898_v48 }
 0x12a   : > { %v3075_v49 = vpop.f32.mrf.mxu0  ;;  %3117 = vmatmul.mubr.bf16.gmra.mxu1 %v926_v47 }
 0x12b   : > { %v910_v50 = vadd.f32 %v3075_v49, %v3702_v42 }
 0x12c   : > { %v901_v51 = vpop.f32.mrf.mxu0 }
 0x12d   : > { %v902_v53 = vadd.f32 %v3702_v42, %v901_v51  ;;  %v928_v56 = vpack.c.bf16 %v910_v50, %v907_v54  ;;  %v3462_v42 = vld [vmem:[%s4166_s7 + $0x28] sm:$0xff]  }
 0x12e   : > { %3176 = vmatprep.subr.bf16.mxu1 %v3462_v42 }
 0x12f   : > { %v927_v55 = vpack.c.bf16 %v902_v53, %v899_v52  ;;  %3177 = vmatpush3.bf16.msra.mxu1 %v3462_v42 }
 0x130   : > { %3178 = vmatprep.subr.bf16.mxu1 %v3463_v60 }
 0x131   : > { %3120 = vmatprep.mubr.bf16.mxu1 %v927_v55 }
 0x132   : > { %3121 = vmatmul.mubr.bf16.gmra.mxu1 %v928_v56 }
 0x133   : > { %3179 = vmatpush3.bf16.msra.mxu1 %v3463_v60 }
 0x134   : > { %3180 = vmatprep.subr.bf16.mxu1 %v3464_v61 }
 0x137   : > { %3181 = vmatpush3.bf16.msra.mxu1 %v3464_v61 }
 0x138   : > { %3182 = vmatprep.subr.bf16.mxu1 %v3465_v62 }
 0x13b   : > { %3183 = vmatpush3.bf16.msra.mxu1 %v3465_v62 }
 0x13c   : > { %3184 = vmatprep.subr.bf16.mxu1 %v3466_v63 }
 0x13f   : > { %3185 = vmatpush3.bf16.msra.mxu1 %v3466_v63 }
 0x1ba   : > { %v3094_v0 = vpop.f32.mrf.mxu1 }
 0x1bb   : > { %v1043_v8 = vadd.f32 %v3094_v0, %v3763_v3 }
 0x1bc   : > { %v1034_v1 = vpop.f32.mrf.mxu1 }
 0x1bd   : > { %v1035_v6 = vadd.f32 %v3763_v3, %v1034_v1 }
 0x1be   : > { %v3095_v2 = vpop.f32.mrf.mxu1 }
 0x1bf   : > { %v1046_v4 = vadd.f32 %v3095_v2, %v3763_v3 }
 0x1c0   : > { %v1037_v5 = vpop.f32.mrf.mxu1 }
 0x1c1   : > { %v1038_v7 = vadd.f32 %v3763_v3, %v1037_v5  ;;  %v1162_v11 = vpack.c.bf16 %v1046_v4, %v1043_v8 }
 0x1c2   : > { %v3098_v9 = vpop.f32.mrf.mxu1 }
 0x1c3   : > { %v1161_v10 = vpack.c.bf16 %v1038_v7, %v1035_v6  ;;  %v1059_v18 = vadd.f32 %v3098_v9, %v3763_v3 }
 0x1c4   : > { %v1050_v12 = vpop.f32.mrf.mxu1 }
 0x1c5   : > { %3140 = vmatprep.mubr.bf16.mxu0 %v1161_v10  ;;  %v1051_v16 = vadd.f32 %v3763_v3, %v1050_v12 }
 0x1c6   : > { %v3099_v13 = vpop.f32.mrf.mxu1  ;;  %3141 = vmatmul.mubr.bf16.vlgmr.msra.gmra.mxu0 %v1162_v11 }
 0x1c7   : > { %v1062_v14 = vadd.f32 %v3099_v13, %v3763_v3 }
 0x1c8   : > { %v1053_v15 = vpop.f32.mrf.mxu1 }
 0x1c9   : > { %v1054_v17 = vadd.f32 %v3763_v3, %v1053_v15  ;;  %v1164_v21 = vpack.c.bf16 %v1062_v14, %v1059_v18  ;;  %v3467_v18 = vld [vmem:[%s4166_s7] sm:$0xff]  }
 0x1ca   : > { %v3102_v19 = vpop.f32.mrf.mxu1  ;;  %3186 = vmatprep.subr.bf16.mxu1 %v3467_v18 }
 0x1cb   : > { %v1163_v20 = vpack.c.bf16 %v1054_v17, %v1051_v16  ;;  %v1075_v28 = vadd.f32 %v3102_v19, %v3763_v3  ;;  %3187 = vmatpush3.bf16.msra.mxu1 %v3467_v18  ;;  %v3468_v19 = vld [vmem:[%s4168_s9 + $0x38] sm:$0xff]  }
 0x1cc   : > { %v1066_v22 = vpop.f32.mrf.mxu1  ;;  %3220 = vmatprep.subr.bf16.mxu0 %v3468_v19 }
 0x1cd   : > { %3144 = vmatprep.mubr.bf16.mxu0 %v1163_v20  ;;  %v1067_v26 = vadd.f32 %v3763_v3, %v1066_v22  ;;  %v3469_v20 = vld [vmem:[%s4168_s9 + $0x30] sm:$0xff]   ;;  %3221 = vmatpush3.bf16.msra.mxu0 %v3468_v19  ;;  %v3472_v22 = vld [vmem:[%s4168_s9 + $0x18] sm:$0xff]  }
 0x1ce   : > { %v3103_v23 = vpop.f32.mrf.mxu1  ;;  %3145 = vmatmul.mubr.bf16.gmra.mxu0 %v1164_v21  ;;  %3222 = vmatprep.subr.bf16.mxu0 %v3469_v20  ;;  %v3471_v21 = vld [vmem:[%s4168_s9 + $0x20] sm:$0xff]  }
 0x1cf   : > { %v1078_v24 = vadd.f32 %v3103_v23, %v3763_v3  ;;  %v3473_v23 = vld [vmem:[%s4168_s9 + $0x10] sm:$0xff]  }
 0x1d0   : > { %v1069_v25 = vpop.f32.mrf.mxu1 }
 0x1d1   : > { %v1070_v27 = vadd.f32 %v3763_v3, %v1069_v25  ;;  %v1166_v31 = vpack.c.bf16 %v1078_v24, %v1075_v28  ;;  %3223 = vmatpush3.bf16.msra.mxu0 %v3469_v20  ;;  %v3474_v24 = vld [vmem:[%s4168_s9 + $0x8] sm:$0xff]   ;;  %v3824_v28 = vld [vmem:[%s4165_s6] ss:$0 sm:$0xff] }
 0x1d2   : > { %v3106_v29 = vpop.f32.mrf.mxu1 }
 0x1d3   : > { %v1165_v30 = vpack.c.bf16 %v1070_v27, %v1067_v26  ;;  %v1091_v38 = vadd.f32 %v3106_v29, %v3763_v3 }
 0x1d4   : > { %v1082_v32 = vpop.f32.mrf.mxu1 }
 0x1d5   : > { %3148 = vmatprep.mubr.bf16.mxu0 %v1165_v30  ;;  %v1083_v36 = vadd.f32 %v3763_v3, %v1082_v32 }
 0x1d6   : > { %v3107_v33 = vpop.f32.mrf.mxu1  ;;  %3149 = vmatmul.mubr.bf16.gmra.mxu0 %v1166_v31 }
 0x1d7   : > { %v1094_v34 = vadd.f32 %v3107_v33, %v3763_v3 }
 0x1d8   : > { %v1085_v35 = vpop.f32.mrf.mxu1 }
 0x1d9   : > { %v1086_v37 = vadd.f32 %v3763_v3, %v1085_v35  ;;  %v1168_v41 = vpack.c.bf16 %v1094_v34, %v1091_v38 }
 0x1da   : > { %v3110_v39 = vpop.f32.mrf.mxu1 }
 0x1db   : > { %v1167_v40 = vpack.c.bf16 %v1086_v37, %v1083_v36  ;;  %v1107_v49 = vadd.f32 %v3110_v39, %v3763_v3 }
 0x1dc   : > { %v1098_v43 = vpop.f32.mrf.mxu1 }
 0x1dd   : > { %3152 = vmatprep.mubr.bf16.mxu0 %v1167_v40  ;;  %v1099_v47 = vadd.f32 %v3763_v3, %v1098_v43 }
 0x1de   : > { %v3111_v44 = vpop.f32.mrf.mxu1  ;;  %3153 = vmatmul.mubr.bf16.gmra.mxu0 %v1168_v41 }
 0x1df   : > { %v1110_v45 = vadd.f32 %v3111_v44, %v3763_v3 }
 0x1e0   : > { %v1101_v46 = vpop.f32.mrf.mxu1 }
 0x1e1   : > { %v1102_v48 = vadd.f32 %v3763_v3, %v1101_v46  ;;  %v1170_v52 = vpack.c.bf16 %v1110_v45, %v1107_v49 }
 0x1e2   : > { %v3114_v50 = vpop.f32.mrf.mxu1 }
 0x1e3   : > { %v1169_v51 = vpack.c.bf16 %v1102_v48, %v1099_v47  ;;  %v1123_v59 = vadd.f32 %v3114_v50, %v3763_v3 }
 0x1e4   : > { %v1114_v53 = vpop.f32.mrf.mxu1 }
 0x1e5   : > { %3156 = vmatprep.mubr.bf16.mxu0 %v1169_v51  ;;  %v1115_v57 = vadd.f32 %v3763_v3, %v1114_v53 }
 0x1e6   : > { %v3115_v54 = vpop.f32.mrf.mxu1  ;;  %3157 = vmatmul.mubr.bf16.gmra.mxu0 %v1170_v52 }
 0x1e7   : > { %v1126_v55 = vadd.f32 %v3115_v54, %v3763_v3 }
 0x1e8   : > { %v1117_v56 = vpop.f32.mrf.mxu1 }
 0x1e9   : > { %v1118_v58 = vadd.f32 %v3763_v3, %v1117_v56  ;;  %v1172_v61 = vpack.c.bf16 %v1126_v55, %v1123_v59 }
 0x1ea   : > { %v3118_v42 = vpop.f32.mrf.mxu1 }
 0x1eb   : > { %v1171_v60 = vpack.c.bf16 %v1118_v58, %v1115_v57  ;;  %v1139_v5 = vadd.f32 %v3118_v42, %v3763_v3 }
 0x1ec   : > { %v1130_v62 = vpop.f32.mrf.mxu1 }
 0x1ed   : > { %3160 = vmatprep.mubr.bf16.mxu0 %v1171_v60  ;;  %v1131_v2 = vadd.f32 %v3763_v3, %v1130_v62 }
 0x1ee   : > { %v3119_v63 = vpop.f32.mrf.mxu1  ;;  %3161 = vmatmul.mubr.bf16.gmra.mxu0 %v1172_v61 }
 0x1ef   : > { %v1142_v0 = vadd.f32 %v3119_v63, %v3763_v3 }
 0x1f0   : > { %v1133_v1 = vpop.f32.mrf.mxu1 }
 0x1f1   : > { %v1134_v4 = vadd.f32 %v3763_v3, %v1133_v1  ;;  %v1174_v8 = vpack.c.bf16 %v1142_v0, %v1139_v5 }
 0x1f2   : > { %v3122_v6 = vpop.f32.mrf.mxu1 }
 0x1f3   : > { %v1173_v7 = vpack.c.bf16 %v1134_v4, %v1131_v2  ;;  %v1155_v15 = vadd.f32 %v3122_v6, %v3763_v3 }
 0x1f4   : > { %v1146_v9 = vpop.f32.mrf.mxu1 }
 0x1f5   : > { %3164 = vmatprep.mubr.bf16.mxu0 %v1173_v7  ;;  %v1147_v13 = vadd.f32 %v3763_v3, %v1146_v9 }
 0x1f6   : > { %v3123_v10 = vpop.f32.mrf.mxu1  ;;  %3165 = vmatmul.mubr.bf16.gmra.mxu0 %v1174_v8 }
 0x1f7   : > { %v1158_v11 = vadd.f32 %v3123_v10, %v3763_v3 }
 0x1f8   : > { %v1149_v12 = vpop.f32.mrf.mxu1 }
 0x1f9   : > { %v1150_v14 = vadd.f32 %v3763_v3, %v1149_v12  ;;  %v1176_v17 = vpack.c.bf16 %v1158_v11, %v1155_v15  ;;  %v3470_v3 = vld [vmem:[%s4168_s9 + $0x28] sm:$0xff]  }
 0x1fa   : > { %3224 = vmatprep.subr.bf16.mxu0 %v3470_v3 }
 0x1fb   : > { %v1175_v16 = vpack.c.bf16 %v1150_v14, %v1147_v13  ;;  %3225 = vmatpush3.bf16.msra.mxu0 %v3470_v3 }
 0x1fc   : > { %3226 = vmatprep.subr.bf16.mxu0 %v3471_v21 }
 0x1fd   : > { %3168 = vmatprep.mubr.bf16.mxu0 %v1175_v16 }
 0x1fe   : > { %3169 = vmatmul.mubr.bf16.gmra.mxu0 %v1176_v17 }
 0x1ff   : > { %3227 = vmatpush3.bf16.msra.mxu0 %v3471_v21 }
 0x200   : > { %3228 = vmatprep.subr.bf16.mxu0 %v3472_v22 }
 0x203   : > { %3229 = vmatpush3.bf16.msra.mxu0 %v3472_v22 }
 0x204   : > { %3230 = vmatprep.subr.bf16.mxu0 %v3473_v23 }
 0x207   : > { %3231 = vmatpush3.bf16.msra.mxu0 %v3473_v23 }
 0x208   : > { %3232 = vmatprep.subr.bf16.mxu0 %v3474_v24 }
 0x20b   : > { %3233 = vmatpush3.bf16.msra.mxu0 %v3474_v24 }
 0x286   : > { %v3142_v25 = vpop.f32.mrf.mxu0 }
 0x287   : > { %v1291_v33 = vadd.f32 %v3142_v25, %v3824_v28 }
 0x288   : > { %v1282_v26 = vpop.f32.mrf.mxu0 }
 0x289   : > { %v1283_v31 = vadd.f32 %v3824_v28, %v1282_v26 }
 0x28a   : > { %v3143_v27 = vpop.f32.mrf.mxu0 }
 0x28b   : > { %v1294_v29 = vadd.f32 %v3143_v27, %v3824_v28 }
 0x28c   : > { %v1285_v30 = vpop.f32.mrf.mxu0 }
 0x28d   : > { %v1286_v32 = vadd.f32 %v3824_v28, %v1285_v30  ;;  %v1410_v36 = vpack.c.bf16 %v1294_v29, %v1291_v33 }
 0x28e   : > { %v3146_v34 = vpop.f32.mrf.mxu0 }
 0x28f   : > { %v1409_v35 = vpack.c.bf16 %v1286_v32, %v1283_v31  ;;  %v1307_v44 = vadd.f32 %v3146_v34, %v3824_v28 }
 0x290   : > { %v1298_v37 = vpop.f32.mrf.mxu0 }
 0x291   : > { %3188 = vmatprep.mubr.bf16.mxu1 %v1409_v35  ;;  %v1299_v41 = vadd.f32 %v3824_v28, %v1298_v37 }
 0x292   : > { %v3147_v38 = vpop.f32.mrf.mxu0  ;;  %3189 = vmatmul.mubr.bf16.vlgmr.msra.gmra.mxu1 %v1410_v36 }
 0x293   : > { %v1310_v39 = vadd.f32 %v3147_v38, %v3824_v28 }
 0x294   : > { %v1301_v40 = vpop.f32.mrf.mxu0 }
 0x295   : > { %v1302_v43 = vadd.f32 %v3824_v28, %v1301_v40  ;;  %v1412_v47 = vpack.c.bf16 %v1310_v39, %v1307_v44  ;;  %v3475_v44 = vld [vmem:[%s4168_s9] sm:$0xff]  }
 0x296   : > { %v3150_v45 = vpop.f32.mrf.mxu0  ;;  %3234 = vmatprep.subr.bf16.mxu0 %v3475_v44 }
 0x297   : > { %v1411_v46 = vpack.c.bf16 %v1302_v43, %v1299_v41  ;;  %v1323_v54 = vadd.f32 %v3150_v45, %v3824_v28  ;;  %3235 = vmatpush3.bf16.msra.mxu0 %v3475_v44  ;;  %v3476_v45 = vld [vmem:[%s4170_s11 + $0x38] sm:$0xff]  }
 0x298   : > { %v1314_v48 = vpop.f32.mrf.mxu0  ;;  %3268 = vmatprep.subr.bf16.mxu1 %v3476_v45 }
 0x299   : > { %3192 = vmatprep.mubr.bf16.mxu1 %v1411_v46  ;;  %v1315_v52 = vadd.f32 %v3824_v28, %v1314_v48  ;;  %v3477_v46 = vld [vmem:[%s4170_s11 + $0x30] sm:$0xff]   ;;  %3269 = vmatpush3.bf16.msra.mxu1 %v3476_v45  ;;  %v3480_v48 = vld [vmem:[%s4170_s11 + $0x18] sm:$0xff]  }
 0x29a   : > { %v3151_v49 = vpop.f32.mrf.mxu0  ;;  %3193 = vmatmul.mubr.bf16.gmra.mxu1 %v1412_v47  ;;  %3270 = vmatprep.subr.bf16.mxu1 %v3477_v46  ;;  %v3479_v47 = vld [vmem:[%s4170_s11 + $0x20] sm:$0xff]  }
 0x29b   : > { %v1326_v50 = vadd.f32 %v3151_v49, %v3824_v28  ;;  %v3481_v49 = vld [vmem:[%s4170_s11 + $0x10] sm:$0xff]  }
 0x29c   : > { %v1317_v51 = vpop.f32.mrf.mxu0 }
 0x29d   : > { %v1318_v53 = vadd.f32 %v3824_v28, %v1317_v51  ;;  %v1414_v57 = vpack.c.bf16 %v1326_v50, %v1323_v54  ;;  %3271 = vmatpush3.bf16.msra.mxu1 %v3477_v46  ;;  %v3482_v50 = vld [vmem:[%s4170_s11 + $0x8] sm:$0xff]   ;;  %v3885_v54 = vld [vmem:[%s4167_s8] ss:$0 sm:$0xff] }
 0x29e   : > { %v3154_v55 = vpop.f32.mrf.mxu0 }
 0x29f   : > { %v1413_v56 = vpack.c.bf16 %v1318_v53, %v1315_v52  ;;  %v1339_v63 = vadd.f32 %v3154_v55, %v3824_v28 }
 0x2a0   : > { %v1330_v58 = vpop.f32.mrf.mxu0 }
 0x2a1   : > { %3196 = vmatprep.mubr.bf16.mxu1 %v1413_v56  ;;  %v1331_v61 = vadd.f32 %v3824_v28, %v1330_v58 }
 0x2a2   : > { %v3155_v59 = vpop.f32.mrf.mxu0  ;;  %3197 = vmatmul.mubr.bf16.gmra.mxu1 %v1414_v57 }
 0x2a3   : > { %v1342_v42 = vadd.f32 %v3155_v59, %v3824_v28 }
 0x2a4   : > { %v1333_v60 = vpop.f32.mrf.mxu0 }
 0x2a5   : > { %v1334_v62 = vadd.f32 %v3824_v28, %v1333_v60  ;;  %v1416_v2 = vpack.c.bf16 %v1342_v42, %v1339_v63 }
 0x2a6   : > { %v3158_v0 = vpop.f32.mrf.mxu0 }
 0x2a7   : > { %v1415_v1 = vpack.c.bf16 %v1334_v62, %v1331_v61  ;;  %v1355_v10 = vadd.f32 %v3158_v0, %v3824_v28 }
 0x2a8   : > { %v1346_v4 = vpop.f32.mrf.mxu0 }
 0x2a9   : > { %3200 = vmatprep.mubr.bf16.mxu1 %v1415_v1  ;;  %v1347_v8 = vadd.f32 %v3824_v28, %v1346_v4 }
 0x2aa   : > { %v3159_v5 = vpop.f32.mrf.mxu0  ;;  %3201 = vmatmul.mubr.bf16.gmra.mxu1 %v1416_v2 }
 0x2ab   : > { %v1358_v6 = vadd.f32 %v3159_v5, %v3824_v28 }
 0x2ac   : > { %v1349_v7 = vpop.f32.mrf.mxu0 }
 0x2ad   : > { %v1350_v9 = vadd.f32 %v3824_v28, %v1349_v7  ;;  %v1418_v13 = vpack.c.bf16 %v1358_v6, %v1355_v10 }
 0x2ae   : > { %v3162_v11 = vpop.f32.mrf.mxu0 }
 0x2af   : > { %v1417_v12 = vpack.c.bf16 %v1350_v9, %v1347_v8  ;;  %v1371_v20 = vadd.f32 %v3162_v11, %v3824_v28 }
 0x2b0   : > { %v1362_v14 = vpop.f32.mrf.mxu0 }
 0x2b1   : > { %3204 = vmatprep.mubr.bf16.mxu1 %v1417_v12  ;;  %v1363_v18 = vadd.f32 %v3824_v28, %v1362_v14 }
 0x2b2   : > { %v3163_v15 = vpop.f32.mrf.mxu0  ;;  %3205 = vmatmul.mubr.bf16.gmra.mxu1 %v1418_v13 }
 0x2b3   : > { %v1374_v16 = vadd.f32 %v3163_v15, %v3824_v28 }
 0x2b4   : > { %v1365_v17 = vpop.f32.mrf.mxu0 }
 0x2b5   : > { %v1366_v19 = vadd.f32 %v3824_v28, %v1365_v17  ;;  %v1420_v22 = vpack.c.bf16 %v1374_v16, %v1371_v20 }
 0x2b6   : > { %v3166_v3 = vpop.f32.mrf.mxu0 }
 0x2b7   : > { %v1419_v21 = vpack.c.bf16 %v1366_v19, %v1363_v18  ;;  %v1387_v30 = vadd.f32 %v3166_v3, %v3824_v28 }
 0x2b8   : > { %v1378_v23 = vpop.f32.mrf.mxu0 }
 0x2b9   : > { %3208 = vmatprep.mubr.bf16.mxu1 %v1419_v21  ;;  %v1379_v27 = vadd.f32 %v3824_v28, %v1378_v23 }
 0x2ba   : > { %v3167_v24 = vpop.f32.mrf.mxu0  ;;  %3209 = vmatmul.mubr.bf16.gmra.mxu1 %v1420_v22 }
 0x2bb   : > { %v1390_v25 = vadd.f32 %v3167_v24, %v3824_v28 }
 0x2bc   : > { %v1381_v26 = vpop.f32.mrf.mxu0 }
 0x2bd   : > { %v1382_v29 = vadd.f32 %v3824_v28, %v1381_v26  ;;  %v1422_v33 = vpack.c.bf16 %v1390_v25, %v1387_v30 }
 0x2be   : > { %v3170_v31 = vpop.f32.mrf.mxu0 }
 0x2bf   : > { %v1421_v32 = vpack.c.bf16 %v1382_v29, %v1379_v27  ;;  %v1403_v40 = vadd.f32 %v3170_v31, %v3824_v28 }
 0x2c0   : > { %v1394_v34 = vpop.f32.mrf.mxu0 }
 0x2c1   : > { %3212 = vmatprep.mubr.bf16.mxu1 %v1421_v32  ;;  %v1395_v38 = vadd.f32 %v3824_v28, %v1394_v34 }
 0x2c2   : > { %v3171_v35 = vpop.f32.mrf.mxu0  ;;  %3213 = vmatmul.mubr.bf16.gmra.mxu1 %v1422_v33 }
 0x2c3   : > { %v1406_v36 = vadd.f32 %v3171_v35, %v3824_v28 }
 0x2c4   : > { %v1397_v37 = vpop.f32.mrf.mxu0 }
 0x2c5   : > { %v1398_v39 = vadd.f32 %v3824_v28, %v1397_v37  ;;  %v1424_v43 = vpack.c.bf16 %v1406_v36, %v1403_v40  ;;  %v3478_v28 = vld [vmem:[%s4170_s11 + $0x28] sm:$0xff]  }
 0x2c6   : > { %3272 = vmatprep.subr.bf16.mxu1 %v3478_v28 }
 0x2c7   : > { %v1423_v41 = vpack.c.bf16 %v1398_v39, %v1395_v38  ;;  %3273 = vmatpush3.bf16.msra.mxu1 %v3478_v28 }
 0x2c8   : > { %3274 = vmatprep.subr.bf16.mxu1 %v3479_v47 }
 0x2c9   : > { %3216 = vmatprep.mubr.bf16.mxu1 %v1423_v41 }
 0x2ca   : > { %3217 = vmatmul.mubr.bf16.gmra.mxu1 %v1424_v43 }
 0x2cb   : > { %3275 = vmatpush3.bf16.msra.mxu1 %v3479_v47 }
 0x2cc   : > { %3276 = vmatprep.subr.bf16.mxu1 %v3480_v48 }
 0x2cf   : > { %3277 = vmatpush3.bf16.msra.mxu1 %v3480_v48 }
 0x2d0   : > { %3278 = vmatprep.subr.bf16.mxu1 %v3481_v49 }
 0x2d3   : > { %3279 = vmatpush3.bf16.msra.mxu1 %v3481_v49 }
 0x2d4   : > { %3280 = vmatprep.subr.bf16.mxu1 %v3482_v50 }
 0x2d7   : > { %3281 = vmatpush3.bf16.msra.mxu1 %v3482_v50 }
 0x352   : > { %v3190_v51 = vpop.f32.mrf.mxu1 }
 0x353   : > { %v1539_v59 = vadd.f32 %v3190_v51, %v3885_v54 }
 0x354   : > { %v1530_v52 = vpop.f32.mrf.mxu1 }
 0x355   : > { %v1531_v57 = vadd.f32 %v3885_v54, %v1530_v52 }
 0x356   : > { %v3191_v53 = vpop.f32.mrf.mxu1 }
 0x357   : > { %v1542_v55 = vadd.f32 %v3191_v53, %v3885_v54 }
 0x358   : > { %v1533_v56 = vpop.f32.mrf.mxu1 }
 0x359   : > { %v1534_v58 = vadd.f32 %v3885_v54, %v1533_v56  ;;  %v1658_v61 = vpack.c.bf16 %v1542_v55, %v1539_v59 }
 0x35a   : > { %v3194_v42 = vpop.f32.mrf.mxu1 }
 0x35b   : > { %v1657_v60 = vpack.c.bf16 %v1534_v58, %v1531_v57  ;;  %v1555_v5 = vadd.f32 %v3194_v42, %v3885_v54 }
 0x35c   : > { %v1546_v62 = vpop.f32.mrf.mxu1 }
 0x35d   : > { %3236 = vmatprep.mubr.bf16.mxu0 %v1657_v60  ;;  %v1547_v2 = vadd.f32 %v3885_v54, %v1546_v62 }
 0x35e   : > { %v3195_v63 = vpop.f32.mrf.mxu1  ;;  %3237 = vmatmul.mubr.bf16.vlgmr.msra.gmra.mxu0 %v1658_v61 }
 0x35f   : > { %v1558_v0 = vadd.f32 %v3195_v63, %v3885_v54 }
 0x360   : > { %v1549_v1 = vpop.f32.mrf.mxu1 }
 0x361   : > { %v1550_v4 = vadd.f32 %v3885_v54, %v1549_v1  ;;  %v1660_v8 = vpack.c.bf16 %v1558_v0, %v1555_v5  ;;  %v3483_v5 = vld [vmem:[%s4170_s11] sm:$0xff]  }
 0x362   : > { %v3198_v6 = vpop.f32.mrf.mxu1  ;;  %3282 = vmatprep.subr.bf16.mxu1 %v3483_v5 }
 0x363   : > { %v1659_v7 = vpack.c.bf16 %v1550_v4, %v1547_v2  ;;  %v1571_v15 = vadd.f32 %v3198_v6, %v3885_v54  ;;  %3283 = vmatpush3.bf16.msra.mxu1 %v3483_v5  ;;  %v3484_v6 = vld [vmem:[%s4172_s13 + $0x38] sm:$0xff]  }
 0x364   : > { %v1562_v9 = vpop.f32.mrf.mxu1  ;;  %3316 = vmatprep.subr.bf16.mxu0 %v3484_v6 }
 0x365   : > { %3240 = vmatprep.mubr.bf16.mxu0 %v1659_v7  ;;  %v1563_v13 = vadd.f32 %v3885_v54, %v1562_v9  ;;  %v3485_v7 = vld [vmem:[%s4172_s13 + $0x30] sm:$0xff]   ;;  %3317 = vmatpush3.bf16.msra.mxu0 %v3484_v6  ;;  %v3488_v9 = vld [vmem:[%s4172_s13 + $0x18] sm:$0xff]  }
 0x366   : > { %v3199_v10 = vpop.f32.mrf.mxu1  ;;  %3241 = vmatmul.mubr.bf16.gmra.mxu0 %v1660_v8  ;;  %3318 = vmatprep.subr.bf16.mxu0 %v3485_v7  ;;  %v3487_v8 = vld [vmem:[%s4172_s13 + $0x20] sm:$0xff]  }
 0x367   : > { %v1574_v11 = vadd.f32 %v3199_v10, %v3885_v54  ;;  %v3489_v10 = vld [vmem:[%s4172_s13 + $0x10] sm:$0xff]  }
 0x368   : > { %v1565_v12 = vpop.f32.mrf.mxu1 }
 0x369   : > { %v1566_v14 = vadd.f32 %v3885_v54, %v1565_v12  ;;  %v1662_v18 = vpack.c.bf16 %v1574_v11, %v1571_v15  ;;  %3319 = vmatpush3.bf16.msra.mxu0 %v3485_v7  ;;  %v3490_v11 = vld [vmem:[%s4172_s13 + $0x8] sm:$0xff]   ;;  %v3946_v15 = vld [vmem:[%s4169_s10] ss:$0 sm:$0xff] }
 0x36a   : > { %v3202_v16 = vpop.f32.mrf.mxu1 }
 0x36b   : > { %v1661_v17 = vpack.c.bf16 %v1566_v14, %v1563_v13  ;;  %v1587_v24 = vadd.f32 %v3202_v16, %v3885_v54 }
 0x36c   : > { %v1578_v19 = vpop.f32.mrf.mxu1 }
 0x36d   : > { %3244 = vmatprep.mubr.bf16.mxu0 %v1661_v17  ;;  %v1579_v22 = vadd.f32 %v3885_v54, %v1578_v19 }
 0x36e   : > { %v3203_v20 = vpop.f32.mrf.mxu1  ;;  %3245 = vmatmul.mubr.bf16.gmra.mxu0 %v1662_v18 }
 0x36f   : > { %v1590_v3 = vadd.f32 %v3203_v20, %v3885_v54 }
 0x370   : > { %v1581_v21 = vpop.f32.mrf.mxu1 }
 0x371   : > { %v1582_v23 = vadd.f32 %v3885_v54, %v1581_v21  ;;  %v1664_v27 = vpack.c.bf16 %v1590_v3, %v1587_v24 }
 0x372   : > { %v3206_v25 = vpop.f32.mrf.mxu1 }
 0x373   : > { %v1663_v26 = vpack.c.bf16 %v1582_v23, %v1579_v22  ;;  %v1603_v35 = vadd.f32 %v3206_v25, %v3885_v54 }
 0x374   : > { %v1594_v29 = vpop.f32.mrf.mxu1 }
 0x375   : > { %3248 = vmatprep.mubr.bf16.mxu0 %v1663_v26  ;;  %v1595_v33 = vadd.f32 %v3885_v54, %v1594_v29 }
 0x376   : > { %v3207_v30 = vpop.f32.mrf.mxu1  ;;  %3249 = vmatmul.mubr.bf16.gmra.mxu0 %v1664_v27 }
 0x377   : > { %v1606_v31 = vadd.f32 %v3207_v30, %v3885_v54 }
 0x378   : > { %v1597_v32 = vpop.f32.mrf.mxu1 }
 0x379   : > { %v1598_v34 = vadd.f32 %v3885_v54, %v1597_v32  ;;  %v1666_v38 = vpack.c.bf16 %v1606_v31, %v1603_v35 }
 0x37a   : > { %v3210_v36 = vpop.f32.mrf.mxu1 }
 0x37b   : > { %v1665_v37 = vpack.c.bf16 %v1598_v34, %v1595_v33  ;;  %v1619_v46 = vadd.f32 %v3210_v36, %v3885_v54 }
 0x37c   : > { %v1610_v39 = vpop.f32.mrf.mxu1 }
 0x37d   : > { %3252 = vmatprep.mubr.bf16.mxu0 %v1665_v37  ;;  %v1611_v44 = vadd.f32 %v3885_v54, %v1610_v39 }
 0x37e   : > { %v3211_v40 = vpop.f32.mrf.mxu1  ;;  %3253 = vmatmul.mubr.bf16.gmra.mxu0 %v1666_v38 }
 0x37f   : > { %v1622_v41 = vadd.f32 %v3211_v40, %v3885_v54 }
 0x380   : > { %v1613_v43 = vpop.f32.mrf.mxu1 }
 0x381   : > { %v1614_v45 = vadd.f32 %v3885_v54, %v1613_v43  ;;  %v1668_v48 = vpack.c.bf16 %v1622_v41, %v1619_v46 }
 0x382   : > { %v3214_v28 = vpop.f32.mrf.mxu1 }
 0x383   : > { %v1667_v47 = vpack.c.bf16 %v1614_v45, %v1611_v44  ;;  %v1635_v56 = vadd.f32 %v3214_v28, %v3885_v54 }
 0x384   : > { %v1626_v49 = vpop.f32.mrf.mxu1 }
 0x385   : > { %3256 = vmatprep.mubr.bf16.mxu0 %v1667_v47  ;;  %v1627_v53 = vadd.f32 %v3885_v54, %v1626_v49 }
 0x386   : > { %v3215_v50 = vpop.f32.mrf.mxu1  ;;  %3257 = vmatmul.mubr.bf16.gmra.mxu0 %v1668_v48 }
 0x387   : > { %v1638_v51 = vadd.f32 %v3215_v50, %v3885_v54 }
 0x388   : > { %v1629_v52 = vpop.f32.mrf.mxu1 }
 0x389   : > { %v1630_v55 = vadd.f32 %v3885_v54, %v1629_v52  ;;  %v1670_v59 = vpack.c.bf16 %v1638_v51, %v1635_v56 }
 0x38a   : > { %v3218_v57 = vpop.f32.mrf.mxu1 }
 0x38b   : > { %v1669_v58 = vpack.c.bf16 %v1630_v55, %v1627_v53  ;;  %v1651_v1 = vadd.f32 %v3218_v57, %v3885_v54 }
 0x38c   : > { %v1642_v42 = vpop.f32.mrf.mxu1 }
 0x38d   : > { %3260 = vmatprep.mubr.bf16.mxu0 %v1669_v58  ;;  %v1643_v63 = vadd.f32 %v3885_v54, %v1642_v42 }
 0x38e   : > { %v3219_v60 = vpop.f32.mrf.mxu1  ;;  %3261 = vmatmul.mubr.bf16.gmra.mxu0 %v1670_v59 }
 0x38f   : > { %v1654_v61 = vadd.f32 %v3219_v60, %v3885_v54 }
 0x390   : > { %v1645_v62 = vpop.f32.mrf.mxu1 }
 0x391   : > { %v1646_v0 = vadd.f32 %v3885_v54, %v1645_v62  ;;  %v1672_v4 = vpack.c.bf16 %v1654_v61, %v1651_v1  ;;  %v3486_v54 = vld [vmem:[%s4172_s13 + $0x28] sm:$0xff]  }
 0x392   : > { %3320 = vmatprep.subr.bf16.mxu0 %v3486_v54 }
 0x393   : > { %v1671_v2 = vpack.c.bf16 %v1646_v0, %v1643_v63  ;;  %3321 = vmatpush3.bf16.msra.mxu0 %v3486_v54 }
 0x394   : > { %3322 = vmatprep.subr.bf16.mxu0 %v3487_v8 }
 0x395   : > { %3264 = vmatprep.mubr.bf16.mxu0 %v1671_v2 }
 0x396   : > { %3265 = vmatmul.mubr.bf16.gmra.mxu0 %v1672_v4 }
 0x397   : > { %3323 = vmatpush3.bf16.msra.mxu0 %v3487_v8 }
 0x398   : > { %3324 = vmatprep.subr.bf16.mxu0 %v3488_v9 }
 0x39b   : > { %3325 = vmatpush3.bf16.msra.mxu0 %v3488_v9 }
 0x39c   : > { %3326 = vmatprep.subr.bf16.mxu0 %v3489_v10 }
 0x39f   : > { %3327 = vmatpush3.bf16.msra.mxu0 %v3489_v10 }
 0x3a0   : > { %3328 = vmatprep.subr.bf16.mxu0 %v3490_v11 }
 0x3a3   : > { %3329 = vmatpush3.bf16.msra.mxu0 %v3490_v11 }
 0x41e   : > { %v3238_v12 = vpop.f32.mrf.mxu0 }
 0x41f   : > { %v1787_v20 = vadd.f32 %v3238_v12, %v3946_v15 }
 0x420   : > { %v1778_v13 = vpop.f32.mrf.mxu0 }
 0x421   : > { %v1779_v18 = vadd.f32 %v3946_v15, %v1778_v13 }
 0x422   : > { %v3239_v14 = vpop.f32.mrf.mxu0 }
 0x423   : > { %v1790_v16 = vadd.f32 %v3239_v14, %v3946_v15 }
 0x424   : > { %v1781_v17 = vpop.f32.mrf.mxu0 }
 0x425   : > { %v1782_v19 = vadd.f32 %v3946_v15, %v1781_v17  ;;  %v1906_v22 = vpack.c.bf16 %v1790_v16, %v1787_v20 }
 0x426   : > { %v3242_v3 = vpop.f32.mrf.mxu0 }
 0x427   : > { %v1905_v21 = vpack.c.bf16 %v1782_v19, %v1779_v18  ;;  %v1803_v30 = vadd.f32 %v3242_v3, %v3946_v15 }
 0x428   : > { %v1794_v23 = vpop.f32.mrf.mxu0 }
 0x429   : > { %3284 = vmatprep.mubr.bf16.mxu1 %v1905_v21  ;;  %v1795_v27 = vadd.f32 %v3946_v15, %v1794_v23 }
 0x42a   : > { %v3243_v24 = vpop.f32.mrf.mxu0  ;;  %3285 = vmatmul.mubr.bf16.vlgmr.msra.gmra.mxu1 %v1906_v22 }
 0x42b   : > { %v1806_v25 = vadd.f32 %v3243_v24, %v3946_v15 }
 0x42c   : > { %v1797_v26 = vpop.f32.mrf.mxu0 }
 0x42d   : > { %v1798_v29 = vadd.f32 %v3946_v15, %v1797_v26  ;;  %v1908_v33 = vpack.c.bf16 %v1806_v25, %v1803_v30  ;;  %v3491_v30 = vld [vmem:[%s4172_s13] sm:$0xff]  }
 0x42e   : > { %v3246_v31 = vpop.f32.mrf.mxu0  ;;  %3330 = vmatprep.subr.bf16.mxu0 %v3491_v30 }
 0x42f   : > { %v1907_v32 = vpack.c.bf16 %v1798_v29, %v1795_v27  ;;  %v1819_v40 = vadd.f32 %v3246_v31, %v3946_v15  ;;  %3331 = vmatpush3.bf16.msra.mxu0 %v3491_v30  ;;  %v3492_v31 = vld [vmem:[%s4174_s15 + $0x38] sm:$0xff]  }
 0x430   : > { %v1810_v34 = vpop.f32.mrf.mxu0  ;;  %3364 = vmatprep.subr.bf16.mxu1 %v3492_v31 }
 0x431   : > { %3288 = vmatprep.mubr.bf16.mxu1 %v1907_v32  ;;  %v1811_v38 = vadd.f32 %v3946_v15, %v1810_v34  ;;  %v3493_v32 = vld [vmem:[%s4174_s15 + $0x30] sm:$0xff]   ;;  %3365 = vmatpush3.bf16.msra.mxu1 %v3492_v31  ;;  %v3496_v34 = vld [vmem:[%s4174_s15 + $0x18] sm:$0xff]  }
 0x432   : > { %v3247_v35 = vpop.f32.mrf.mxu0  ;;  %3289 = vmatmul.mubr.bf16.gmra.mxu1 %v1908_v33  ;;  %3366 = vmatprep.subr.bf16.mxu1 %v3493_v32  ;;  %v3495_v33 = vld [vmem:[%s4174_s15 + $0x20] sm:$0xff]  }
 0x433   : > { %v1822_v36 = vadd.f32 %v3247_v35, %v3946_v15  ;;  %v3497_v35 = vld [vmem:[%s4174_s15 + $0x10] sm:$0xff]  }
 0x434   : > { %v1813_v37 = vpop.f32.mrf.mxu0 }
 0x435   : > { %v1814_v39 = vadd.f32 %v3946_v15, %v1813_v37  ;;  %v1910_v44 = vpack.c.bf16 %v1822_v36, %v1819_v40  ;;  %3367 = vmatpush3.bf16.msra.mxu1 %v3493_v32  ;;  %v3498_v36 = vld [vmem:[%s4174_s15 + $0x8] sm:$0xff]   ;;  %v4007_v40 = vld [vmem:[%s4171_s12] ss:$0 sm:$0xff] }
 0x436   : > { %v3250_v41 = vpop.f32.mrf.mxu0 }
 0x437   : > { %v1909_v43 = vpack.c.bf16 %v1814_v39, %v1811_v38  ;;  %v1835_v50 = vadd.f32 %v3250_v41, %v3946_v15 }
 0x438   : > { %v1826_v45 = vpop.f32.mrf.mxu0 }
 0x439   : > { %3292 = vmatprep.mubr.bf16.mxu1 %v1909_v43  ;;  %v1827_v48 = vadd.f32 %v3946_v15, %v1826_v45 }
 0x43a   : > { %v3251_v46 = vpop.f32.mrf.mxu0  ;;  %3293 = vmatmul.mubr.bf16.gmra.mxu1 %v1910_v44 }
 0x43b   : > { %v1838_v28 = vadd.f32 %v3251_v46, %v3946_v15 }
 0x43c   : > { %v1829_v47 = vpop.f32.mrf.mxu0 }
 0x43d   : > { %v1830_v49 = vadd.f32 %v3946_v15, %v1829_v47  ;;  %v1912_v53 = vpack.c.bf16 %v1838_v28, %v1835_v50 }
 0x43e   : > { %v3254_v51 = vpop.f32.mrf.mxu0 }
 0x43f   : > { %v1911_v52 = vpack.c.bf16 %v1830_v49, %v1827_v48  ;;  %v1851_v60 = vadd.f32 %v3254_v51, %v3946_v15 }
 0x440   : > { %v1842_v55 = vpop.f32.mrf.mxu0 }
 0x441   : > { %3296 = vmatprep.mubr.bf16.mxu1 %v1911_v52  ;;  %v1843_v59 = vadd.f32 %v3946_v15, %v1842_v55 }
 0x442   : > { %v3255_v56 = vpop.f32.mrf.mxu0  ;;  %3297 = vmatmul.mubr.bf16.gmra.mxu1 %v1912_v53 }
 0x443   : > { %v1854_v57 = vadd.f32 %v3255_v56, %v3946_v15 }
 0x444   : > { %v1845_v58 = vpop.f32.mrf.mxu0 }
 0x445   : > { %v1846_v42 = vadd.f32 %v3946_v15, %v1845_v58  ;;  %v1914_v63 = vpack.c.bf16 %v1854_v57, %v1851_v60 }
 0x446   : > { %v3258_v61 = vpop.f32.mrf.mxu0 }
 0x447   : > { %v1913_v62 = vpack.c.bf16 %v1846_v42, %v1843_v59  ;;  %v1867_v7 = vadd.f32 %v3258_v61, %v3946_v15 }
 0x448   : > { %v1858_v0 = vpop.f32.mrf.mxu0 }
 0x449   : > { %3300 = vmatprep.mubr.bf16.mxu1 %v1913_v62  ;;  %v1859_v5 = vadd.f32 %v3946_v15, %v1858_v0 }
 0x44a   : > { %v3259_v1 = vpop.f32.mrf.mxu0  ;;  %3301 = vmatmul.mubr.bf16.gmra.mxu1 %v1914_v63 }
 0x44b   : > { %v1870_v2 = vadd.f32 %v3259_v1, %v3946_v15 }
 0x44c   : > { %v1861_v4 = vpop.f32.mrf.mxu0 }
 0x44d   : > { %v1862_v6 = vadd.f32 %v3946_v15, %v1861_v4  ;;  %v1916_v9 = vpack.c.bf16 %v1870_v2, %v1867_v7 }
 0x44e   : > { %v3262_v54 = vpop.f32.mrf.mxu0 }
 0x44f   : > { %v1915_v8 = vpack.c.bf16 %v1862_v6, %v1859_v5  ;;  %v1883_v17 = vadd.f32 %v3262_v54, %v3946_v15 }
 0x450   : > { %v1874_v10 = vpop.f32.mrf.mxu0 }
 0x451   : > { %3304 = vmatprep.mubr.bf16.mxu1 %v1915_v8  ;;  %v1875_v14 = vadd.f32 %v3946_v15, %v1874_v10 }
 0x452   : > { %v3263_v11 = vpop.f32.mrf.mxu0  ;;  %3305 = vmatmul.mubr.bf16.gmra.mxu1 %v1916_v9 }
 0x453   : > { %v1886_v12 = vadd.f32 %v3263_v11, %v3946_v15 }
 0x454   : > { %v1877_v13 = vpop.f32.mrf.mxu0 }
 0x455   : > { %v1878_v16 = vadd.f32 %v3946_v15, %v1877_v13  ;;  %v1918_v20 = vpack.c.bf16 %v1886_v12, %v1883_v17 }
 0x456   : > { %v3266_v18 = vpop.f32.mrf.mxu0 }
 0x457   : > { %v1917_v19 = vpack.c.bf16 %v1878_v16, %v1875_v14  ;;  %v1899_v26 = vadd.f32 %v3266_v18, %v3946_v15 }
 0x458   : > { %v1890_v3 = vpop.f32.mrf.mxu0 }
 0x459   : > { %3308 = vmatprep.mubr.bf16.mxu1 %v1917_v19  ;;  %v1891_v24 = vadd.f32 %v3946_v15, %v1890_v3 }
 0x45a   : > { %v3267_v21 = vpop.f32.mrf.mxu0  ;;  %3309 = vmatmul.mubr.bf16.gmra.mxu1 %v1918_v20 }
 0x45b   : > { %v1902_v22 = vadd.f32 %v3267_v21, %v3946_v15 }
 0x45c   : > { %v1893_v23 = vpop.f32.mrf.mxu0 }
 0x45d   : > { %v1894_v25 = vadd.f32 %v3946_v15, %v1893_v23  ;;  %v1920_v29 = vpack.c.bf16 %v1902_v22, %v1899_v26  ;;  %v3494_v15 = vld [vmem:[%s4174_s15 + $0x28] sm:$0xff]  }
 0x45e   : > { %3368 = vmatprep.subr.bf16.mxu1 %v3494_v15 }
 0x45f   : > { %v1919_v27 = vpack.c.bf16 %v1894_v25, %v1891_v24  ;;  %3369 = vmatpush3.bf16.msra.mxu1 %v3494_v15 }
 0x460   : > { %3370 = vmatprep.subr.bf16.mxu1 %v3495_v33 }
 0x461   : > { %3312 = vmatprep.mubr.bf16.mxu1 %v1919_v27 }
 0x462   : > { %3313 = vmatmul.mubr.bf16.gmra.mxu1 %v1920_v29 }
 0x463   : > { %3371 = vmatpush3.bf16.msra.mxu1 %v3495_v33 }
 0x464   : > { %3372 = vmatprep.subr.bf16.mxu1 %v3496_v34 }
 0x467   : > { %3373 = vmatpush3.bf16.msra.mxu1 %v3496_v34 }
 0x468   : > { %3374 = vmatprep.subr.bf16.mxu1 %v3497_v35 }
 0x46b   : > { %3375 = vmatpush3.bf16.msra.mxu1 %v3497_v35 }
 0x46c   : > { %3376 = vmatprep.subr.bf16.mxu1 %v3498_v36 }
 0x46f   : > { %3377 = vmatpush3.bf16.msra.mxu1 %v3498_v36 }
 0x4ea   : > { %v3286_v37 = vpop.f32.mrf.mxu1 }
 0x4eb   : > { %v2035_v46 = vadd.f32 %v3286_v37, %v4007_v40 }
 0x4ec   : > { %v2026_v38 = vpop.f32.mrf.mxu1 }
 0x4ed   : > { %v2027_v44 = vadd.f32 %v4007_v40, %v2026_v38 }
 0x4ee   : > { %v3287_v39 = vpop.f32.mrf.mxu1 }
 0x4ef   : > { %v2038_v41 = vadd.f32 %v3287_v39, %v4007_v40 }
 0x4f0   : > { %v2029_v43 = vpop.f32.mrf.mxu1 }
 0x4f1   : > { %v2030_v45 = vadd.f32 %v4007_v40, %v2029_v43  ;;  %v2154_v48 = vpack.c.bf16 %v2038_v41, %v2035_v46 }
 0x4f2   : > { %v3290_v28 = vpop.f32.mrf.mxu1 }
 0x4f3   : > { %v2153_v47 = vpack.c.bf16 %v2030_v45, %v2027_v44  ;;  %v2051_v56 = vadd.f32 %v3290_v28, %v4007_v40 }
 0x4f4   : > { %v2042_v49 = vpop.f32.mrf.mxu1 }
 0x4f5   : > { %3332 = vmatprep.mubr.bf16.mxu0 %v2153_v47  ;;  %v2043_v53 = vadd.f32 %v4007_v40, %v2042_v49 }
 0x4f6   : > { %v3291_v50 = vpop.f32.mrf.mxu1  ;;  %3333 = vmatmul.mubr.bf16.vlgmr.msra.gmra.mxu0 %v2154_v48 }
 0x4f7   : > { %v2054_v51 = vadd.f32 %v3291_v50, %v4007_v40 }
 0x4f8   : > { %v2045_v52 = vpop.f32.mrf.mxu1 }
 0x4f9   : > { %v2046_v55 = vadd.f32 %v4007_v40, %v2045_v52  ;;  %v2156_v59 = vpack.c.bf16 %v2054_v51, %v2051_v56  ;;  %v3499_v56 = vld [vmem:[%s4174_s15] sm:$0xff]  }
 0x4fa   : > { %v3294_v57 = vpop.f32.mrf.mxu1  ;;  %3378 = vmatprep.subr.bf16.mxu1 %v3499_v56 }
 0x4fb   : > { %v2155_v58 = vpack.c.bf16 %v2046_v55, %v2043_v53  ;;  %v2067_v1 = vadd.f32 %v3294_v57, %v4007_v40  ;;  %3379 = vmatpush3.bf16.msra.mxu1 %v3499_v56 }
 0x4fc   : > { %v2058_v42 = vpop.f32.mrf.mxu1 }
 0x4fd   : > { %3336 = vmatprep.mubr.bf16.mxu0 %v2155_v58  ;;  %v2059_v63 = vadd.f32 %v4007_v40, %v2058_v42  ;;  %v4047_v42 = vld [vmem:[%s4173_s14] ss:$0 sm:$0xff] }
 0x4fe   : > { %v3295_v60 = vpop.f32.mrf.mxu1  ;;  %3337 = vmatmul.mubr.bf16.gmra.mxu0 %v2156_v59 }
 0x4ff   : > { %v2070_v61 = vadd.f32 %v3295_v60, %v4007_v40 }
 0x500   : > { %v2061_v62 = vpop.f32.mrf.mxu1 }
 0x501   : > { %v2062_v0 = vadd.f32 %v4007_v40, %v2061_v62  ;;  %v2158_v5 = vpack.c.bf16 %v2070_v61, %v2067_v1 }
 0x502   : > { %v3298_v2 = vpop.f32.mrf.mxu1 }
 0x503   : > { %v2157_v4 = vpack.c.bf16 %v2062_v0, %v2059_v63  ;;  %v2083_v11 = vadd.f32 %v3298_v2, %v4007_v40 }
 0x504   : > { %v2074_v6 = vpop.f32.mrf.mxu1 }
 0x505   : > { %3340 = vmatprep.mubr.bf16.mxu0 %v2157_v4  ;;  %v2075_v9 = vadd.f32 %v4007_v40, %v2074_v6 }
 0x506   : > { %v3299_v7 = vpop.f32.mrf.mxu1  ;;  %3341 = vmatmul.mubr.bf16.gmra.mxu0 %v2158_v5 }
 0x507   : > { %v2086_v54 = vadd.f32 %v3299_v7, %v4007_v40 }
 0x508   : > { %v2077_v8 = vpop.f32.mrf.mxu1 }
 0x509   : > { %v2078_v10 = vadd.f32 %v4007_v40, %v2077_v8  ;;  %v2160_v14 = vpack.c.bf16 %v2086_v54, %v2083_v11 }
 0x50a   : > { %v3302_v12 = vpop.f32.mrf.mxu1 }
 0x50b   : > { %v2159_v13 = vpack.c.bf16 %v2078_v10, %v2075_v9  ;;  %v2099_v21 = vadd.f32 %v3302_v12, %v4007_v40 }
 0x50c   : > { %v2090_v16 = vpop.f32.mrf.mxu1 }
 0x50d   : > { %3344 = vmatprep.mubr.bf16.mxu0 %v2159_v13  ;;  %v2091_v20 = vadd.f32 %v4007_v40, %v2090_v16 }
 0x50e   : > { %v3303_v17 = vpop.f32.mrf.mxu1  ;;  %3345 = vmatmul.mubr.bf16.gmra.mxu0 %v2160_v14 }
 0x50f   : > { %v2102_v18 = vadd.f32 %v3303_v17, %v4007_v40 }
 0x510   : > { %v2093_v19 = vpop.f32.mrf.mxu1 }
 0x511   : > { %v2094_v3 = vadd.f32 %v4007_v40, %v2093_v19  ;;  %v2162_v24 = vpack.c.bf16 %v2102_v18, %v2099_v21 }
 0x512   : > { %v3306_v22 = vpop.f32.mrf.mxu1 }
 0x513   : > { %v2161_v23 = vpack.c.bf16 %v2094_v3, %v2091_v20  ;;  %v2115_v32 = vadd.f32 %v3306_v22, %v4007_v40 }
 0x514   : > { %v2106_v25 = vpop.f32.mrf.mxu1 }
 0x515   : > { %3348 = vmatprep.mubr.bf16.mxu0 %v2161_v23  ;;  %v2107_v30 = vadd.f32 %v4007_v40, %v2106_v25 }
 0x516   : > { %v3307_v26 = vpop.f32.mrf.mxu1  ;;  %3349 = vmatmul.mubr.bf16.gmra.mxu0 %v2162_v24 }
 0x517   : > { %v2118_v27 = vadd.f32 %v3307_v26, %v4007_v40 }
 0x518   : > { %v2109_v29 = vpop.f32.mrf.mxu1 }
 0x519   : > { %v2110_v31 = vadd.f32 %v4007_v40, %v2109_v29  ;;  %v2164_v34 = vpack.c.bf16 %v2118_v27, %v2115_v32 }
 0x51a   : > { %v3310_v15 = vpop.f32.mrf.mxu1 }
 0x51b   : > { %v2163_v33 = vpack.c.bf16 %v2110_v31, %v2107_v30  ;;  %v2131_v43 = vadd.f32 %v3310_v15, %v4007_v40 }
 0x51c   : > { %v2122_v35 = vpop.f32.mrf.mxu1 }
 0x51d   : > { %3352 = vmatprep.mubr.bf16.mxu0 %v2163_v33  ;;  %v2123_v39 = vadd.f32 %v4007_v40, %v2122_v35 }
 0x51e   : > { %v3311_v36 = vpop.f32.mrf.mxu1  ;;  %3353 = vmatmul.mubr.bf16.gmra.mxu0 %v2164_v34 }
 0x51f   : > { %v2134_v37 = vadd.f32 %v3311_v36, %v4007_v40 }
 0x520   : > { %v2125_v38 = vpop.f32.mrf.mxu1 }
 0x521   : > { %v2126_v41 = vadd.f32 %v4007_v40, %v2125_v38  ;;  %v2166_v46 = vpack.c.bf16 %v2134_v37, %v2131_v43 }
 0x522   : > { %v3314_v44 = vpop.f32.mrf.mxu1 }
 0x523   : > { %v2165_v45 = vpack.c.bf16 %v2126_v41, %v2123_v39  ;;  %v2147_v52 = vadd.f32 %v3314_v44, %v4007_v40 }
 0x524   : > { %v2138_v28 = vpop.f32.mrf.mxu1 }
 0x525   : > { %3356 = vmatprep.mubr.bf16.mxu0 %v2165_v45  ;;  %v2139_v50 = vadd.f32 %v4007_v40, %v2138_v28 }
 0x526   : > { %v3315_v47 = vpop.f32.mrf.mxu1  ;;  %3357 = vmatmul.mubr.bf16.gmra.mxu0 %v2166_v46 }
 0x527   : > { %v2150_v48 = vadd.f32 %v3315_v47, %v4007_v40 }
 0x528   : > { %v2141_v49 = vpop.f32.mrf.mxu1 }
 0x529   : > { %v2142_v51 = vadd.f32 %v4007_v40, %v2141_v49  ;;  %v2168_v55 = vpack.c.bf16 %v2150_v48, %v2147_v52 }
 0x52b   : > { %v2167_v53 = vpack.c.bf16 %v2142_v51, %v2139_v50 }
 0x52d   : > { %3360 = vmatprep.mubr.bf16.mxu0 %v2167_v53 }
 0x52e   : > { %3361 = vmatmul.mubr.bf16.gmra.mxu0 %v2168_v55 }
 0x5b6   : > { %v3334_v57 = vpop.f32.mrf.mxu0 }
 0x5b7   : > { %v2283_v63 = vadd.f32 %v3334_v57, %v4047_v42 }
 0x5b8   : > { %v2274_v58 = vpop.f32.mrf.mxu0 }
 0x5b9   : > { %v2275_v61 = vadd.f32 %v4047_v42, %v2274_v58 }
 0x5ba   : > { %v3335_v59 = vpop.f32.mrf.mxu0 }
 0x5bb   : > { %v2286_v40 = vadd.f32 %v3335_v59, %v4047_v42 }
 0x5bc   : > { %v2277_v60 = vpop.f32.mrf.mxu0 }
 0x5bd   : > { %v2278_v62 = vadd.f32 %v4047_v42, %v2277_v60  ;;  %v2402_v2 = vpack.c.bf16 %v2286_v40, %v2283_v63 }
 0x5be   : > { %v3338_v0 = vpop.f32.mrf.mxu0 }
 0x5bf   : > { %v2401_v1 = vpack.c.bf16 %v2278_v62, %v2275_v61  ;;  %v2299_v9 = vadd.f32 %v3338_v0, %v4047_v42 }
 0x5c0   : > { %v2290_v4 = vpop.f32.mrf.mxu0 }
 0x5c1   : > { %3380 = vmatprep.mubr.bf16.mxu1 %v2401_v1  ;;  %v2291_v54 = vadd.f32 %v4047_v42, %v2290_v4 }
 0x5c2   : > { %v3339_v5 = vpop.f32.mrf.mxu0  ;;  %3381 = vmatmul.mubr.bf16.vlgmr.msra.gmra.mxu1 %v2402_v2 }
 0x5c3   : > { %v2302_v6 = vadd.f32 %v3339_v5, %v4047_v42 }
 0x5c4   : > { %v2293_v7 = vpop.f32.mrf.mxu0 }
 0x5c5   : > { %v2294_v8 = vadd.f32 %v4047_v42, %v2293_v7  ;;  %v2404_v12 = vpack.c.bf16 %v2302_v6, %v2299_v9  ;;  %v4085_v9 = vld [vmem:[%s4175_s16] ss:$0 sm:$0xff] }
 0x5c6   : > { %v3342_v10 = vpop.f32.mrf.mxu0 }
 0x5c7   : > { %v2403_v11 = vpack.c.bf16 %v2294_v8, %v2291_v54  ;;  %v2315_v20 = vadd.f32 %v3342_v10, %v4047_v42 }
 0x5c8   : > { %v2306_v13 = vpop.f32.mrf.mxu0 }
 0x5c9   : > { %3384 = vmatprep.mubr.bf16.mxu1 %v2403_v11  ;;  %v2307_v18 = vadd.f32 %v4047_v42, %v2306_v13 }
 0x5ca   : > { %v3343_v14 = vpop.f32.mrf.mxu0  ;;  %3385 = vmatmul.mubr.bf16.gmra.mxu1 %v2404_v12 }
 0x5cb   : > { %v2318_v16 = vadd.f32 %v3343_v14, %v4047_v42 }
 0x5cc   : > { %v2309_v17 = vpop.f32.mrf.mxu0 }
 0x5cd   : > { %v2310_v19 = vadd.f32 %v4047_v42, %v2309_v17  ;;  %v2406_v22 = vpack.c.bf16 %v2318_v16, %v2315_v20 }
 0x5ce   : > { %v3346_v3 = vpop.f32.mrf.mxu0 }
 0x5cf   : > { %v2405_v21 = vpack.c.bf16 %v2310_v19, %v2307_v18  ;;  %v2331_v30 = vadd.f32 %v3346_v3, %v4047_v42 }
 0x5d0   : > { %v2322_v23 = vpop.f32.mrf.mxu0 }
 0x5d1   : > { %3388 = vmatprep.mubr.bf16.mxu1 %v2405_v21  ;;  %v2323_v27 = vadd.f32 %v4047_v42, %v2322_v23 }
 0x5d2   : > { %v3347_v24 = vpop.f32.mrf.mxu0  ;;  %3389 = vmatmul.mubr.bf16.gmra.mxu1 %v2406_v22 }
 0x5d3   : > { %v2334_v25 = vadd.f32 %v3347_v24, %v4047_v42 }
 0x5d4   : > { %v2325_v26 = vpop.f32.mrf.mxu0 }
 0x5d5   : > { %v2326_v29 = vadd.f32 %v4047_v42, %v2325_v26  ;;  %v2408_v15 = vpack.c.bf16 %v2334_v25, %v2331_v30 }
 0x5d6   : > { %v3350_v31 = vpop.f32.mrf.mxu0 }
 0x5d7   : > { %v2407_v32 = vpack.c.bf16 %v2326_v29, %v2323_v27  ;;  %v2347_v39 = vadd.f32 %v3350_v31, %v4047_v42 }
 0x5d8   : > { %v2338_v33 = vpop.f32.mrf.mxu0 }
 0x5d9   : > { %3392 = vmatprep.mubr.bf16.mxu1 %v2407_v32  ;;  %v2339_v37 = vadd.f32 %v4047_v42, %v2338_v33 }
 0x5da   : > { %v3351_v34 = vpop.f32.mrf.mxu0  ;;  %3393 = vmatmul.mubr.bf16.gmra.mxu1 %v2408_v15 }
 0x5db   : > { %v2350_v35 = vadd.f32 %v3351_v34, %v4047_v42 }
 0x5dc   : > { %v2341_v36 = vpop.f32.mrf.mxu0 }
 0x5dd   : > { %v2342_v38 = vadd.f32 %v4047_v42, %v2341_v36  ;;  %v2410_v44 = vpack.c.bf16 %v2350_v35, %v2347_v39 }
 0x5de   : > { %v3354_v41 = vpop.f32.mrf.mxu0 }
 0x5df   : > { %v2409_v43 = vpack.c.bf16 %v2342_v38, %v2339_v37  ;;  %v2363_v50 = vadd.f32 %v3354_v41, %v4047_v42 }
 0x5e0   : > { %v2354_v45 = vpop.f32.mrf.mxu0 }
 0x5e1   : > { %3396 = vmatprep.mubr.bf16.mxu1 %v2409_v43  ;;  %v2355_v48 = vadd.f32 %v4047_v42, %v2354_v45 }
 0x5e2   : > { %v3355_v46 = vpop.f32.mrf.mxu0  ;;  %3397 = vmatmul.mubr.bf16.gmra.mxu1 %v2410_v44 }
 0x5e3   : > { %v2366_v28 = vadd.f32 %v3355_v46, %v4047_v42 }
 0x5e4   : > { %v2357_v47 = vpop.f32.mrf.mxu0 }
 0x5e5   : > { %v2358_v49 = vadd.f32 %v4047_v42, %v2357_v47  ;;  %v2412_v53 = vpack.c.bf16 %v2366_v28, %v2363_v50 }
 0x5e6   : > { %v3358_v51 = vpop.f32.mrf.mxu0 }
 0x5e7   : > { %v2411_v52 = vpack.c.bf16 %v2358_v49, %v2355_v48  ;;  %v2379_v60 = vadd.f32 %v3358_v51, %v4047_v42 }
 0x5e8   : > { %v2370_v55 = vpop.f32.mrf.mxu0 }
 0x5e9   : > { %3400 = vmatprep.mubr.bf16.mxu1 %v2411_v52  ;;  %v2371_v59 = vadd.f32 %v4047_v42, %v2370_v55 }
 0x5ea   : > { %v3359_v56 = vpop.f32.mrf.mxu0  ;;  %3401 = vmatmul.mubr.bf16.gmra.mxu1 %v2412_v53 }
 0x5eb   : > { %v2382_v57 = vadd.f32 %v3359_v56, %v4047_v42 }
 0x5ec   : > { %v2373_v58 = vpop.f32.mrf.mxu0 }
 0x5ed   : > { %v2374_v40 = vadd.f32 %v4047_v42, %v2373_v58  ;;  %v2414_v63 = vpack.c.bf16 %v2382_v57, %v2379_v60 }
 0x5ee   : > { %v3362_v61 = vpop.f32.mrf.mxu0 }
 0x5ef   : > { %v2413_v62 = vpack.c.bf16 %v2374_v40, %v2371_v59  ;;  %v2395_v7 = vadd.f32 %v3362_v61, %v4047_v42 }
 0x5f0   : > { %v2386_v0 = vpop.f32.mrf.mxu0 }
 0x5f1   : > { %3404 = vmatprep.mubr.bf16.mxu1 %v2413_v62  ;;  %v2387_v5 = vadd.f32 %v4047_v42, %v2386_v0 }
 0x5f2   : > { %v3363_v1 = vpop.f32.mrf.mxu0  ;;  %3405 = vmatmul.mubr.bf16.gmra.mxu1 %v2414_v63 }
 0x5f3   : > { %v2398_v2 = vadd.f32 %v3363_v1, %v4047_v42 }
 0x5f4   : > { %v2389_v4 = vpop.f32.mrf.mxu0 }
 0x5f5   : > { %v2390_v6 = vadd.f32 %v4047_v42, %v2389_v4  ;;  %v2416_v8 = vpack.c.bf16 %v2398_v2, %v2395_v7 }
 0x5f7   : > { %v2415_v54 = vpack.c.bf16 %v2390_v6, %v2387_v5 }
 0x5f9   : > { %3408 = vmatprep.mubr.bf16.mxu1 %v2415_v54 }
 0x5fa   : > { %3409 = vmatmul.mubr.bf16.gmra.mxu1 %v2416_v8 }
 0x682   : > { %v3382_v42 = vpop.f32.mrf.mxu1 }
 0x683   : > { %v2531_v10 = vadd.f32 %v3382_v42, %v4085_v9 }
 0x684   : > { %v2522_v11 = vpop.f32.mrf.mxu1 }
 0x685   : > { %2651 = vst [vmem:[%s4090_s22 + $0x10] sm:$0xff] %v2531_v10  ;;  %v2523_v12 = vadd.f32 %v4085_v9, %v2522_v11 }
 0x686   : > { %v3383_v13 = vpop.f32.mrf.mxu1 }
 0x687   : > { %2649 = vst [vmem:[%s4090_s22] sm:$0xff] %v2523_v12  ;;  %v2534_v14 = vadd.f32 %v3383_v13, %v4085_v9 }
 0x688   : > { %v2525_v16 = vpop.f32.mrf.mxu1 }
 0x689   : > { %2652 = vst [vmem:[%s4090_s22 + $0x18] sm:$0xff] %v2534_v14  ;;  %v2526_v17 = vadd.f32 %v4085_v9, %v2525_v16 }
 0x68a   : > { %v3386_v18 = vpop.f32.mrf.mxu1 }
 0x68b   : > { %2650 = vst [vmem:[%s4090_s22 + $0x8] sm:$0xff] %v2526_v17  ;;  %v2547_v19 = vadd.f32 %v3386_v18, %v4085_v9 }
 0x68c   : > { %v2538_v20 = vpop.f32.mrf.mxu1 }
 0x68d   : > { %2655 = vst [vmem:[%s4090_s22 + $0x30] sm:$0xff] %v2547_v19  ;;  %v2539_v3 = vadd.f32 %v4085_v9, %v2538_v20 }
 0x68e   : > { %v3387_v21 = vpop.f32.mrf.mxu1 }
 0x68f   : > { %2653 = vst [vmem:[%s4090_s22 + $0x20] sm:$0xff] %v2539_v3  ;;  %v2550_v22 = vadd.f32 %v3387_v21, %v4085_v9 }
 0x690   : > { %v2541_v23 = vpop.f32.mrf.mxu1 }
 0x691   : > { %2656 = vst [vmem:[%s4090_s22 + $0x38] sm:$0xff] %v2550_v22  ;;  %v2542_v24 = vadd.f32 %v4085_v9, %v2541_v23 }
 0x692   : > { %v3390_v25 = vpop.f32.mrf.mxu1 }
 0x693   : > { %2654 = vst [vmem:[%s4090_s22 + $0x28] sm:$0xff] %v2542_v24  ;;  %v2563_v26 = vadd.f32 %v3390_v25, %v4085_v9 }
 0x694   : > { %v2554_v27 = vpop.f32.mrf.mxu1 }
 0x695   : > { %2659 = vst [vmem:[%s4090_s22 + $0x50] sm:$0xff] %v2563_v26  ;;  %v2555_v29 = vadd.f32 %v4085_v9, %v2554_v27 }
 0x696   : > { %v3391_v30 = vpop.f32.mrf.mxu1 }
 0x697   : > { %2657 = vst [vmem:[%s4090_s22 + $0x40] sm:$0xff] %v2555_v29  ;;  %v2566_v31 = vadd.f32 %v3391_v30, %v4085_v9 }
 0x698   : > { %v2557_v32 = vpop.f32.mrf.mxu1 }
 0x699   : > { %2660 = vst [vmem:[%s4090_s22 + $0x58] sm:$0xff] %v2566_v31  ;;  %v2558_v15 = vadd.f32 %v4085_v9, %v2557_v32 }
 0x69a   : > { %v3394_v33 = vpop.f32.mrf.mxu1 }
 0x69b   : > { %2658 = vst [vmem:[%s4090_s22 + $0x48] sm:$0xff] %v2558_v15  ;;  %v2579_v34 = vadd.f32 %v3394_v33, %v4085_v9 }
 0x69c   : > { %v2570_v35 = vpop.f32.mrf.mxu1 }
 0x69d   : > { %2663 = vst [vmem:[%s4090_s22 + $0x70] sm:$0xff] %v2579_v34  ;;  %v2571_v36 = vadd.f32 %v4085_v9, %v2570_v35 }
 0x69e   : > { %v3395_v37 = vpop.f32.mrf.mxu1 }
 0x69f   : > { %2661 = vst [vmem:[%s4090_s22 + $0x60] sm:$0xff] %v2571_v36  ;;  %v2582_v38 = vadd.f32 %v3395_v37, %v4085_v9 }
 0x6a0   : > { %v2573_v39 = vpop.f32.mrf.mxu1 }
 0x6a1   : > { %2664 = vst [vmem:[%s4090_s22 + $0x78] sm:$0xff] %v2582_v38  ;;  %v2574_v41 = vadd.f32 %v4085_v9, %v2573_v39 }
 0x6a2   : > { %v3398_v43 = vpop.f32.mrf.mxu1 }
 0x6a3   : > { %2662 = vst [vmem:[%s4090_s22 + $0x68] sm:$0xff] %v2574_v41  ;;  %v2595_v44 = vadd.f32 %v3398_v43, %v4085_v9 }
 0x6a4   : > { %v2586_v45 = vpop.f32.mrf.mxu1 }
 0x6a5   : > { %2667 = vst [vmem:[%s4090_s22 + $0x90] sm:$0xff] %v2595_v44  ;;  %v2587_v46 = vadd.f32 %v4085_v9, %v2586_v45 }
 0x6a6   : > { %v3399_v28 = vpop.f32.mrf.mxu1 }
 0x6a7   : > { %2665 = vst [vmem:[%s4090_s22 + $0x80] sm:$0xff] %v2587_v46  ;;  %v2598_v47 = vadd.f32 %v3399_v28, %v4085_v9 }
 0x6a8   : > { %v2589_v48 = vpop.f32.mrf.mxu1 }
 0x6a9   : > { %2668 = vst [vmem:[%s4090_s22 + $0x98] sm:$0xff] %v2598_v47  ;;  %v2590_v49 = vadd.f32 %v4085_v9, %v2589_v48 }
 0x6aa   : > { %v3402_v50 = vpop.f32.mrf.mxu1 }
 0x6ab   : > { %2666 = vst [vmem:[%s4090_s22 + $0x88] sm:$0xff] %v2590_v49  ;;  %v2611_v51 = vadd.f32 %v3402_v50, %v4085_v9 }
 0x6ac   : > { %v2602_v52 = vpop.f32.mrf.mxu1 }
 0x6ad   : > { %2671 = vst [vmem:[%s4090_s22 + $0xb0] sm:$0xff] %v2611_v51  ;;  %v2603_v53 = vadd.f32 %v4085_v9, %v2602_v52 }
 0x6ae   : > { %v3403_v55 = vpop.f32.mrf.mxu1 }
 0x6af   : > { %2669 = vst [vmem:[%s4090_s22 + $0xa0] sm:$0xff] %v2603_v53  ;;  %v2614_v56 = vadd.f32 %v3403_v55, %v4085_v9 }
 0x6b0   : > { %v2605_v57 = vpop.f32.mrf.mxu1 }
 0x6b1   : > { %2672 = vst [vmem:[%s4090_s22 + $0xb8] sm:$0xff] %v2614_v56  ;;  %v2606_v58 = vadd.f32 %v4085_v9, %v2605_v57 }
 0x6b2   : > { %v3406_v59 = vpop.f32.mrf.mxu1 }
 0x6b3   : > { %2670 = vst [vmem:[%s4090_s22 + $0xa8] sm:$0xff] %v2606_v58  ;;  %v2627_v40 = vadd.f32 %v3406_v59, %v4085_v9 }
 0x6b4   : > { %v2618_v60 = vpop.f32.mrf.mxu1 }
 0x6b5   : > { %2675 = vst [vmem:[%s4090_s22 + $0xd0] sm:$0xff] %v2627_v40  ;;  %v2619_v61 = vadd.f32 %v4085_v9, %v2618_v60 }
 0x6b6   : > { %v3407_v62 = vpop.f32.mrf.mxu1 }
 0x6b7   : > { %2673 = vst [vmem:[%s4090_s22 + $0xc0] sm:$0xff] %v2619_v61  ;;  %v2630_v63 = vadd.f32 %v3407_v62, %v4085_v9 }
 0x6b8   : > { %v2621_v0 = vpop.f32.mrf.mxu1 }
 0x6b9   : > { %2676 = vst [vmem:[%s4090_s22 + $0xd8] sm:$0xff] %v2630_v63  ;;  %v2622_v1 = vadd.f32 %v4085_v9, %v2621_v0 }
 0x6ba   : > { %v3410_v2 = vpop.f32.mrf.mxu1 }
 0x6bb   : > { %2674 = vst [vmem:[%s4090_s22 + $0xc8] sm:$0xff] %v2622_v1  ;;  %v2643_v4 = vadd.f32 %v3410_v2, %v4085_v9 }
 0x6bc   : > { %v2634_v5 = vpop.f32.mrf.mxu1 }
 0x6bd   : > { %2679 = vst [vmem:[%s4090_s22 + $0xf0] sm:$0xff] %v2643_v4  ;;  %v2635_v6 = vadd.f32 %v4085_v9, %v2634_v5 }
 0x6be   : > { %v3411_v7 = vpop.f32.mrf.mxu1 }
 0x6bf   : > { %2677 = vst [vmem:[%s4090_s22 + $0xe0] sm:$0xff] %v2635_v6  ;;  %v2646_v54 = vadd.f32 %v3411_v7, %v4085_v9 }
 0x6c0   : > { %v2637_v8 = vpop.f32.mrf.mxu1 }
 0x6c1   : > { %2680 = vst [vmem:[%s4090_s22 + $0xf8] sm:$0xff] %v2646_v54  ;;  %v2638_v42 = vadd.f32 %v4085_v9, %v2637_v8 }
 0x6c3   : > { %2678 = vst [vmem:[%s4090_s22 + $0xe8] sm:$0xff] %v2638_v42 }
 0x6c4 PF: > { %s27_s24 = sadd.s32 1, %s3506_s24  }
 0x6c5   : > { %p24_p4 = scmp.ge.s32.totalorder %s27_s24, 4  }
 0x6c7   :  { %26 = sbr.rel (!%p24_p4) target bundleno = 3 (0x3), region = 118 }

</bundles_post_ra>
